<compile_context>
chip_gen: v5e
topology: v5e:2x2
jax: 0.10.0
libtpu: 0.0.40
codegen_flags: <defaults>
</compile_context>

<pallas_src>
import functools

import jax
import jax.numpy as jnp
import numpy as np
from jax.experimental import pallas as pl
from jax.experimental.pallas import tpu as pltpu

LANE = 128
SUBLANE = 8


def _round_up(x, m):
    return (x + m - 1) // m * m


def _silu(x):
    return x * jax.nn.sigmoid(x)


def decoder_kernel(z_ref, w_ref, b_ref, out_ref, *, num_layers):
    wdt = w_ref.dtype
    # z = silu(z)  (padding columns stay exactly zero: silu(0) == 0)
    h = _silu(z_ref[...].astype(jnp.float32))
    # hidden layers: linear + silu  (dropout is identity in eval mode)
    for i in range(num_layers - 1):
        h = jnp.dot(h.astype(wdt), w_ref[i], preferred_element_type=jnp.float32)
        h = _silu(h + b_ref[i].astype(jnp.float32))
    # final projection, no activation
    o = jnp.dot(h.astype(wdt), w_ref[num_layers - 1],
                preferred_element_type=jnp.float32)
    out_ref[...] = (o + b_ref[num_layers - 1].astype(jnp.float32)).astype(out_ref.dtype)


def make_decoder_params(key, n, input_size):
    """PyTorch-style U(-1/sqrt(fan_in), 1/sqrt(fan_in)) init.

    Returns a list of (w, b) per layer with w shaped (fan_in, fan_out)
    (already transposed for row-major x @ W) and b shaped (fan_out,)."""
    dims = [(4, 1 * n), (1 * n, 2 * n), (2 * n, 3 * n),
            (3 * n, 4 * n), (4 * n, 5 * n), (5 * n, input_size)]
    keys = jax.random.split(key, len(dims))
    params = []
    for k, (fi, fo) in zip(keys, dims):
        kw, kb = jax.random.split(k)
        bound = 1.0 / np.sqrt(fi)
        w = jax.random.uniform(kw, (fi, fo), jnp.float32, -bound, bound)
        b = jax.random.uniform(kb, (fo,), jnp.float32, -bound, bound)
        params.append((w, b))
    return params


def pack_decoder_params(params, dtype=jnp.float32):
    """Pack per-layer (w, b) into two zero-padded slabs.

    w_slab: (L, W, W) with layer i's (fan_in, fan_out) block in the top-left.
    b_slab: (L, 1, W).
    W = round_up(max layer width, 128) so every matmul is lane-aligned and the
    zero padding is mathematically inert.  Pass dtype=jnp.bfloat16 on v6e/v7x
    for the bf16 MXU path (accumulation stays f32 in the kernel)."""
    num_layers = len(params)
    widths = [params[0][0].shape[0]] + [w.shape[1] for w, _ in params]
    w_pad = _round_up(max(widths), LANE)
    w_slab = np.zeros((num_layers, w_pad, w_pad), np.float32)
    b_slab = np.zeros((num_layers, 1, w_pad), np.float32)
    for i, (w, b) in enumerate(params):
        fi, fo = w.shape
        w_slab[i, :fi, :fo] = np.asarray(w)
        b_slab[i, 0, :fo] = np.asarray(b)
    return jnp.asarray(w_slab, dtype), jnp.asarray(b_slab, dtype)


@functools.partial(jax.jit, static_argnames=("input_size", "block_batch"))
def decoder_forward(z, w_slab, b_slab, *, input_size, block_batch=512):
    batch, latent = z.shape
    num_layers, w_pad, _ = w_slab.shape

    # Batch tile: multiple of 8 sublanes, capped so double-buffered tiles plus
    # the ~1.5 MB weight slab sit far under the 32 MiB scoped-VMEM default.
    bt = min(block_batch, _round_up(batch, SUBLANE))
    batch_pad = _round_up(batch, bt)
    num_blocks = batch_pad // bt

    # Lane-dense, zero-padded input slab (padding is preserved by the network).
    zp = jnp.zeros((batch_pad, w_pad), z.dtype)
    zp = zp.at[:batch, :latent].set(z)

    kernel = functools.partial(decoder_kernel, num_layers=num_layers)

    out = pl.pallas_call(
        kernel,
        out_shape=jax.ShapeDtypeStruct((batch_pad, w_pad), jnp.float32),
        grid=(num_blocks,),
        in_specs=[
            # batch-tiled activations: pipelined across grid steps
            pl.BlockSpec((bt, w_pad), lambda i: (i, 0)),
            # packed weights/biases: constant index_map -> fetched once,
            # VMEM-resident for the whole grid
            pl.BlockSpec((num_layers, w_pad, w_pad), lambda i: (0, 0, 0)),
            pl.BlockSpec((num_layers, 1, w_pad), lambda i: (0, 0, 0)),
        ],
        out_specs=pl.BlockSpec((bt, w_pad), lambda i: (i, 0)),
        compiler_params=pltpu.CompilerParams(
            dimension_semantics=("parallel",),  # shard batch across v7x cores
        ),
    )(zp, w_slab, b_slab)

    # Slice away batch/lane padding (lane-dense store happened inside the kernel).
    return out[:batch, :input_size]


def decoder_forward_ref(z, params):
    """Pure-JAX reference (eval-mode forward) for correctness checking."""
    h = _silu(z)
    for w, b in params[:-1]:
        h = _silu(h @ w + b)
    w, b = params[-1]
    return h @ w + b


if __name__ == "__main__":
    n = 32            # hidden width multiplier (layer widths: 32/64/96/128/160)
    input_size = 5    # matches dataset[:, :5] in the reference script
    latent_dim = 4

    key = jax.random.PRNGKey(0)
    k_z, k_params = jax.random.split(key)

    params = make_decoder_params(k_params, n, input_size)
    w_slab, b_slab = pack_decoder_params(params, dtype=jnp.float32)

    # Small smoke test (batch=8) plus a larger batch that exercises the
    # batch-tiled, megacore-parallel grid path.
    for batch in (8, 1024):
        kz = jax.random.fold_in(k_z, batch)
        z = jax.random.normal(kz, (batch, latent_dim), jnp.float32)

        out = decoder_forward(z, w_slab, b_slab, input_size=input_size)
        out = jax.block_until_ready(out)

        ref = decoder_forward_ref(z, params)
        np.testing.assert_allclose(np.asarray(out), np.asarray(ref),
                                   rtol=5e-5, atol=5e-5)

    # TODO(synk): dropout layers are eval-mode identities here; a training-mode
    # path would need pltpu.prng_seed + pltpu.prng_random_bits masks.
    print("KERNEL_OK")
</pallas_src>

<mosaic_0001>
module attributes {stable_mosaic.version = 11 : i64} {
  func.func @decoder_kernel(%arg0: i32, %arg1: memref<8x256xf32, #tpu.memory_space<vmem>>, %arg2: memref<6x256x256xf32, #tpu.memory_space<vmem>>, %arg3: memref<6x1x256xf32, #tpu.memory_space<vmem>>, %arg4: memref<8x256xf32, #tpu.memory_space<vmem>>) attributes {dimension_semantics = [#tpu.dimension_semantics<parallel>], iteration_bounds = array<i64: 1>, scalar_prefetch = 0 : i64, scratch_operands = 0 : i64, tpu.core_type = #tpu.core_type<tc>, window_params = [{transform_indices = @transform_0, window_bounds = array<i64: 8, 256>}, {pipeline_mode = #tpu.pipeline_mode<synchronous>, transform_indices = @transform_1, window_bounds = array<i64: 6, 256, 256>}, {pipeline_mode = #tpu.pipeline_mode<synchronous>, transform_indices = @transform_2, window_bounds = array<i64: 6, 1, 256>}, {transform_indices = @transform_3, window_bounds = array<i64: 8, 256>}]} {
    %c0 = arith.constant 0 : index
    %c0_0 = arith.constant 0 : index
    %0 = vector.load %arg1[%c0, %c0_0] : memref<8x256xf32, #tpu.memory_space<vmem>>, vector<8x256xf32>
    %1 = arith.negf %0 : vector<8x256xf32>
    %2 = math.exp %1 : vector<8x256xf32>
    %cst = arith.constant 1.000000e+00 : f32
    %3 = vector.broadcast %cst : f32 to vector<8x256xf32>
    %4 = arith.addf %3, %2 : vector<8x256xf32>
    %5 = arith.divf %3, %4 : vector<8x256xf32>
    %6 = arith.mulf %0, %5 : vector<8x256xf32>
    %c0_1 = arith.constant 0 : index
    %c0_2 = arith.constant 0 : index
    %c0_3 = arith.constant 0 : index
    %7 = vector.load %arg2[%c0_1, %c0_2, %c0_3] : memref<6x256x256xf32, #tpu.memory_space<vmem>>, vector<1x256x256xf32>
    %8 = vector.shape_cast %7 : vector<1x256x256xf32> to vector<256x256xf32>
    %cst_4 = arith.constant dense<0.000000e+00> : vector<8x256xf32>
    %9 = tpu.matmul %6, %8, %cst_4 {dimension_numbers = #tpu.dot_dimension_numbers<[1], [0], [0], [1], [0, 0, 1, 1], [], []>} : vector<8x256xf32>, vector<256x256xf32>, vector<8x256xf32> -> vector<8x256xf32>
    %c0_5 = arith.constant 0 : index
    %c0_6 = arith.constant 0 : index
    %c0_7 = arith.constant 0 : index
    %10 = vector.load %arg3[%c0_5, %c0_6, %c0_7] : memref<6x1x256xf32, #tpu.memory_space<vmem>>, vector<1x1x256xf32>
    %11 = vector.shape_cast %10 : vector<1x1x256xf32> to vector<1x256xf32>
    %12 = vector.broadcast %11 : vector<1x256xf32> to vector<8x256xf32>
    %13 = arith.addf %9, %12 : vector<8x256xf32>
    %14 = arith.negf %13 : vector<8x256xf32>
    %15 = math.exp %14 : vector<8x256xf32>
    %cst_8 = arith.constant 1.000000e+00 : f32
    %16 = vector.broadcast %cst_8 : f32 to vector<8x256xf32>
    %17 = arith.addf %16, %15 : vector<8x256xf32>
    %18 = arith.divf %16, %17 : vector<8x256xf32>
    %19 = arith.mulf %13, %18 : vector<8x256xf32>
    %c1 = arith.constant 1 : index
    %c0_9 = arith.constant 0 : index
    %c0_10 = arith.constant 0 : index
    %20 = vector.load %arg2[%c1, %c0_9, %c0_10] : memref<6x256x256xf32, #tpu.memory_space<vmem>>, vector<1x256x256xf32>
    %21 = vector.shape_cast %20 : vector<1x256x256xf32> to vector<256x256xf32>
    %cst_11 = arith.constant dense<0.000000e+00> : vector<8x256xf32>
    %22 = tpu.matmul %19, %21, %cst_11 {dimension_numbers = #tpu.dot_dimension_numbers<[1], [0], [0], [1], [0, 0, 1, 1], [], []>} : vector<8x256xf32>, vector<256x256xf32>, vector<8x256xf32> -> vector<8x256xf32>
    %c1_12 = arith.constant 1 : index
    %c0_13 = arith.constant 0 : index
    %c0_14 = arith.constant 0 : index
    %23 = vector.load %arg3[%c1_12, %c0_13, %c0_14] : memref<6x1x256xf32, #tpu.memory_space<vmem>>, vector<1x1x256xf32>
    %24 = vector.shape_cast %23 : vector<1x1x256xf32> to vector<1x256xf32>
    %25 = vector.broadcast %24 : vector<1x256xf32> to vector<8x256xf32>
    %26 = arith.addf %22, %25 : vector<8x256xf32>
    %27 = arith.negf %26 : vector<8x256xf32>
    %28 = math.exp %27 : vector<8x256xf32>
    %cst_15 = arith.constant 1.000000e+00 : f32
    %29 = vector.broadcast %cst_15 : f32 to vector<8x256xf32>
    %30 = arith.addf %29, %28 : vector<8x256xf32>
    %31 = arith.divf %29, %30 : vector<8x256xf32>
    %32 = arith.mulf %26, %31 : vector<8x256xf32>
    %c2 = arith.constant 2 : index
    %c0_16 = arith.constant 0 : index
    %c0_17 = arith.constant 0 : index
    %33 = vector.load %arg2[%c2, %c0_16, %c0_17] : memref<6x256x256xf32, #tpu.memory_space<vmem>>, vector<1x256x256xf32>
    %34 = vector.shape_cast %33 : vector<1x256x256xf32> to vector<256x256xf32>
    %cst_18 = arith.constant dense<0.000000e+00> : vector<8x256xf32>
    %35 = tpu.matmul %32, %34, %cst_18 {dimension_numbers = #tpu.dot_dimension_numbers<[1], [0], [0], [1], [0, 0, 1, 1], [], []>} : vector<8x256xf32>, vector<256x256xf32>, vector<8x256xf32> -> vector<8x256xf32>
    %c2_19 = arith.constant 2 : index
    %c0_20 = arith.constant 0 : index
    %c0_21 = arith.constant 0 : index
    %36 = vector.load %arg3[%c2_19, %c0_20, %c0_21] : memref<6x1x256xf32, #tpu.memory_space<vmem>>, vector<1x1x256xf32>
    %37 = vector.shape_cast %36 : vector<1x1x256xf32> to vector<1x256xf32>
    %38 = vector.broadcast %37 : vector<1x256xf32> to vector<8x256xf32>
    %39 = arith.addf %35, %38 : vector<8x256xf32>
    %40 = arith.negf %39 : vector<8x256xf32>
    %41 = math.exp %40 : vector<8x256xf32>
    %cst_22 = arith.constant 1.000000e+00 : f32
    %42 = vector.broadcast %cst_22 : f32 to vector<8x256xf32>
    %43 = arith.addf %42, %41 : vector<8x256xf32>
    %44 = arith.divf %42, %43 : vector<8x256xf32>
    %45 = arith.mulf %39, %44 : vector<8x256xf32>
    %c3 = arith.constant 3 : index
    %c0_23 = arith.constant 0 : index
    %c0_24 = arith.constant 0 : index
    %46 = vector.load %arg2[%c3, %c0_23, %c0_24] : memref<6x256x256xf32, #tpu.memory_space<vmem>>, vector<1x256x256xf32>
    %47 = vector.shape_cast %46 : vector<1x256x256xf32> to vector<256x256xf32>
    %cst_25 = arith.constant dense<0.000000e+00> : vector<8x256xf32>
    %48 = tpu.matmul %45, %47, %cst_25 {dimension_numbers = #tpu.dot_dimension_numbers<[1], [0], [0], [1], [0, 0, 1, 1], [], []>} : vector<8x256xf32>, vector<256x256xf32>, vector<8x256xf32> -> vector<8x256xf32>
    %c3_26 = arith.constant 3 : index
    %c0_27 = arith.constant 0 : index
    %c0_28 = arith.constant 0 : index
    %49 = vector.load %arg3[%c3_26, %c0_27, %c0_28] : memref<6x1x256xf32, #tpu.memory_space<vmem>>, vector<1x1x256xf32>
    %50 = vector.shape_cast %49 : vector<1x1x256xf32> to vector<1x256xf32>
    %51 = vector.broadcast %50 : vector<1x256xf32> to vector<8x256xf32>
    %52 = arith.addf %48, %51 : vector<8x256xf32>
    %53 = arith.negf %52 : vector<8x256xf32>
    %54 = math.exp %53 : vector<8x256xf32>
    %cst_29 = arith.constant 1.000000e+00 : f32
    %55 = vector.broadcast %cst_29 : f32 to vector<8x256xf32>
    %56 = arith.addf %55, %54 : vector<8x256xf32>
    %57 = arith.divf %55, %56 : vector<8x256xf32>
    %58 = arith.mulf %52, %57 : vector<8x256xf32>
    %c4 = arith.constant 4 : index
    %c0_30 = arith.constant 0 : index
    %c0_31 = arith.constant 0 : index
    %59 = vector.load %arg2[%c4, %c0_30, %c0_31] : memref<6x256x256xf32, #tpu.memory_space<vmem>>, vector<1x256x256xf32>
    %60 = vector.shape_cast %59 : vector<1x256x256xf32> to vector<256x256xf32>
    %cst_32 = arith.constant dense<0.000000e+00> : vector<8x256xf32>
    %61 = tpu.matmul %58, %60, %cst_32 {dimension_numbers = #tpu.dot_dimension_numbers<[1], [0], [0], [1], [0, 0, 1, 1], [], []>} : vector<8x256xf32>, vector<256x256xf32>, vector<8x256xf32> -> vector<8x256xf32>
    %c4_33 = arith.constant 4 : index
    %c0_34 = arith.constant 0 : index
    %c0_35 = arith.constant 0 : index
    %62 = vector.load %arg3[%c4_33, %c0_34, %c0_35] : memref<6x1x256xf32, #tpu.memory_space<vmem>>, vector<1x1x256xf32>
    %63 = vector.shape_cast %62 : vector<1x1x256xf32> to vector<1x256xf32>
    %64 = vector.broadcast %63 : vector<1x256xf32> to vector<8x256xf32>
    %65 = arith.addf %61, %64 : vector<8x256xf32>
    %66 = arith.negf %65 : vector<8x256xf32>
    %67 = math.exp %66 : vector<8x256xf32>
    %cst_36 = arith.constant 1.000000e+00 : f32
    %68 = vector.broadcast %cst_36 : f32 to vector<8x256xf32>
    %69 = arith.addf %68, %67 : vector<8x256xf32>
    %70 = arith.divf %68, %69 : vector<8x256xf32>
    %71 = arith.mulf %65, %70 : vector<8x256xf32>
    %c5 = arith.constant 5 : index
    %c0_37 = arith.constant 0 : index
    %c0_38 = arith.constant 0 : index
    %72 = vector.load %arg2[%c5, %c0_37, %c0_38] : memref<6x256x256xf32, #tpu.memory_space<vmem>>, vector<1x256x256xf32>
    %73 = vector.shape_cast %72 : vector<1x256x256xf32> to vector<256x256xf32>
    %cst_39 = arith.constant dense<0.000000e+00> : vector<8x256xf32>
    %74 = tpu.matmul %71, %73, %cst_39 {dimension_numbers = #tpu.dot_dimension_numbers<[1], [0], [0], [1], [0, 0, 1, 1], [], []>} : vector<8x256xf32>, vector<256x256xf32>, vector<8x256xf32> -> vector<8x256xf32>
    %c5_40 = arith.constant 5 : index
    %c0_41 = arith.constant 0 : index
    %c0_42 = arith.constant 0 : index
    %75 = vector.load %arg3[%c5_40, %c0_41, %c0_42] : memref<6x1x256xf32, #tpu.memory_space<vmem>>, vector<1x1x256xf32>
    %76 = vector.shape_cast %75 : vector<1x1x256xf32> to vector<1x256xf32>
    %77 = vector.broadcast %76 : vector<1x256xf32> to vector<8x256xf32>
    %78 = arith.addf %74, %77 : vector<8x256xf32>
    %c0_43 = arith.constant 0 : index
    %c0_44 = arith.constant 0 : index
    %79 = vector.load %arg4[%c0_43, %c0_44] : memref<8x256xf32, #tpu.memory_space<vmem>>, vector<8x256xf32>
    tpu.vector_store %arg4[%c0_43, %c0_44], %78 {strides = array<i32>} : memref<8x256xf32, #tpu.memory_space<vmem>>, vector<8x256xf32>,
    return
  }
  func.func @transform_0(%arg0: i32) -> (i32, i32) {
    %c0_i32 = arith.constant 0 : i32
    %c0_i32_0 = arith.constant 0 : i32
    return %arg0, %c0_i32 : i32, i32
  }
  func.func @transform_1(%arg0: i32) -> (i32, i32, i32) {
    %c0_i32 = arith.constant 0 : i32
    %c0_i32_0 = arith.constant 0 : i32
    %c0_i32_1 = arith.constant 0 : i32
    %c0_i32_2 = arith.constant 0 : i32
    return %c0_i32, %c0_i32_0, %c0_i32_1 : i32, i32, i32
  }
  func.func @transform_2(%arg0: i32) -> (i32, i32, i32) {
    %c0_i32 = arith.constant 0 : i32
    %c0_i32_0 = arith.constant 0 : i32
    %c0_i32_1 = arith.constant 0 : i32
    %c0_i32_2 = arith.constant 0 : i32
    return %c0_i32, %c0_i32_0, %c0_i32_1 : i32, i32, i32
  }
  func.func @transform_3(%arg0: i32) -> (i32, i32) {
    %c0_i32 = arith.constant 0 : i32
    %c0_i32_0 = arith.constant 0 : i32
    return %arg0, %c0_i32 : i32, i32
  }
}

</mosaic_0001>

<bundles_post_ra>
// kernel: decoder_forward.1
= control target key start
LH: loop header
LB: loop body
LE: loop exit
PB: predicated region body
PF: predicated region fallthrough
CT: control target
= control target key end

     0   :  { %8 = vsyncpa [#allocation3], 0  ;;  %s1376_s0 = inlined_call_operand.vmem [shape: f32[8,256], index: 0, kind: input, shape index: {}]   ;;  %s1377_s1 = inlined_call_operand.hbm [shape: f32[6,256,256], index: 1, kind: input, shape index: {}]   ;;  %s1378_s2 = inlined_call_operand.hbm [shape: f32[6,1,256], index: 2, kind: input, shape index: {}]   ;;  %s1379_s3 = inlined_call_operand.vmem [shape: f32[8,256], index: 3, kind: output, shape index: {}]  }
   0x1   :  { %s16_s14 = sshll.u32 %s1377_s1, 4  ;;  %s17_s14 = int_to_ptr.hbm [resolvable:$true] %s16_s14 }
   0x2   :  { %9 = vsyncpa [#allocation5], 0  ;;  %s1324_s15 = smov [#allocation2]   ;;  %s29_s19 = sshll.u32 %s1378_s2, 4  ;;  %s30_s19 = int_to_ptr.hbm [resolvable:$true] %s29_s19 }
   0x3   :  { %s18_s16 = sshll.u32 %s1324_s15, 4  ;;  %s1325_s20 = smov 256   ;;  %s19_s16 = int_to_ptr.vmem [resolvable:$true] %s18_s16 }
   0x4   :  { %s1326_s21 = smov 16   ;;  %s1327_s22 = smov [#allocation4]  }
   0x5   :  { %24 = dma.hbm_to_vmem [thread:$0]  %s17_s14, 49152, %s19_s16, [#allocation3], %s1325_s20, %s1325_s20, %s1326_s21  }
   0x6   :  { %s31_s23 = sshll.u32 %s1327_s22, 4  ;;  %s1328_s24 = smov 32   ;;  %s32_s23 = int_to_ptr.vmem [resolvable:$true] %s31_s23 }
   0x7   :  { %s1329_s25 = smov 2  }
   0x8   :  { %37 = dma.hbm_to_vmem [thread:$0]  %s30_s19, 192, %s32_s23, [#allocation5], %s1328_s24, %s1328_s24, %s1329_s25  }
   0x9   :  { %1320 = dma.done.wait [#allocation3], 49152  }
   0xa   :  { %1321 = vsyncadd [#allocation3], 4294918144 }
   0xb   :  { %1322 = dma.done.wait [#allocation5], 192  }
   0xc   :  { %1323 = vsyncadd [#allocation5], 4294967104  ;;  %v118_v0 = vld [vmem:[#allocation2 + $0xf0] sm:$0xff]  ;;  %v119_v1 = vld [vmem:[#allocation2 + $0xf8] sm:$0xff] }
   0xd   :  { %v116_v2 = vld [vmem:[#allocation2 + $0xe0] sm:$0xff]  ;;  %158 = vmatpush.msra.mxu0 %v118_v0  ;;  %198 = vmatpush.msra.mxu2 %v119_v1  ;;  %v150_v3 = vld [vmem:[#allocation2 + $0x1f0] sm:$0xff]  ;;  %v117_v4 = vld [vmem:[#allocation2 + $0xe8] sm:$0xff] }
   0xe   :  { %v151_v5 = vld [vmem:[#allocation2 + $0x1f8] sm:$0xff]  ;;  %178 = vmatpush.msra.mxu1 %v150_v3  ;;  %v114_v6 = vld [vmem:[#allocation2 + $0xd0] sm:$0xff]  ;;  %v148_v7 = vld [vmem:[#allocation2 + $0x1e0] sm:$0xff] }
   0xf   :  { %218 = vmatpush.msra.mxu3 %v151_v5  ;;  %v115_v8 = vld [vmem:[#allocation2 + $0xd8] sm:$0xff]  ;;  %159 = vmatpush.msra.mxu0 %v116_v2  ;;  %v149_v9 = vld [vmem:[#allocation2 + $0x1e8] sm:$0xff]  ;;  %v146_v10 = vld [vmem:[#allocation2 + $0x1d0] sm:$0xff] }
  0x10   :  { %199 = vmatpush.msra.mxu2 %v117_v4  ;;  %179 = vmatpush.msra.mxu1 %v148_v7  ;;  %v112_v11 = vld [vmem:[#allocation2 + $0xc0] sm:$0xff]  ;;  %v113_v12 = vld [vmem:[#allocation2 + $0xc8] sm:$0xff]  ;;  %v147_v13 = vld [vmem:[#allocation2 + $0x1d8] sm:$0xff] }
  0x11   :  { %219 = vmatpush.msra.mxu3 %v149_v9  ;;  %160 = vmatpush.msra.mxu0 %v114_v6  ;;  %v144_v14 = vld [vmem:[#allocation2 + $0x1c0] sm:$0xff]  ;;  %v145_v15 = vld [vmem:[#allocation2 + $0x1c8] sm:$0xff]  ;;  %v110_v16 = vld [vmem:[#allocation2 + $0xb0] sm:$0xff] }
  0x12   :  { %200 = vmatpush.msra.mxu2 %v115_v8  ;;  %180 = vmatpush.msra.mxu1 %v146_v10  ;;  %v111_v17 = vld [vmem:[#allocation2 + $0xb8] sm:$0xff]  ;;  %v142_v18 = vld [vmem:[#allocation2 + $0x1b0] sm:$0xff]  ;;  %v108_v20 = vld [vmem:[#allocation2 + $0xa0] sm:$0xff] }
  0x13   :  { %220 = vmatpush.msra.mxu3 %v147_v13  ;;  %161 = vmatpush.msra.mxu0 %v112_v11  ;;  %v143_v19 = vld [vmem:[#allocation2 + $0x1b8] sm:$0xff]  ;;  %v109_v21 = vld [vmem:[#allocation2 + $0xa8] sm:$0xff]  ;;  %v140_v22 = vld [vmem:[#allocation2 + $0x1a0] sm:$0xff] }
  0x14   :  { %201 = vmatpush.msra.mxu2 %v113_v12  ;;  %181 = vmatpush.msra.mxu1 %v144_v14  ;;  %v141_v23 = vld [vmem:[#allocation2 + $0x1a8] sm:$0xff]  ;;  %v106_v24 = vld [vmem:[#allocation2 + $0x90] sm:$0xff]  ;;  %v107_v25 = vld [vmem:[#allocation2 + $0x98] sm:$0xff] }
  0x15   :  { %221 = vmatpush.msra.mxu3 %v145_v15  ;;  %162 = vmatpush.msra.mxu0 %v110_v16  ;;  %v138_v26 = vld [vmem:[#allocation2 + $0x190] sm:$0xff]  ;;  %v139_v27 = vld [vmem:[#allocation2 + $0x198] sm:$0xff]  ;;  %v104_v28 = vld [vmem:[#allocation2 + $0x80] sm:$0xff] }
  0x16   :  { %202 = vmatpush.msra.mxu2 %v111_v17  ;;  %182 = vmatpush.msra.mxu1 %v142_v18  ;;  %v105_v29 = vld [vmem:[#allocation2 + $0x88] sm:$0xff]  ;;  %v136_v30 = vld [vmem:[#allocation2 + $0x180] sm:$0xff]  ;;  %v102_v32 = vld [vmem:[#allocation2 + $0x70] sm:$0xff] }
  0x17   :  { %222 = vmatpush.msra.mxu3 %v143_v19  ;;  %163 = vmatpush.msra.mxu0 %v108_v20  ;;  %v137_v31 = vld [vmem:[#allocation2 + $0x188] sm:$0xff]  ;;  %v103_v33 = vld [vmem:[#allocation2 + $0x78] sm:$0xff]  ;;  %v134_v34 = vld [vmem:[#allocation2 + $0x170] sm:$0xff] }
  0x18   :  { %203 = vmatpush.msra.mxu2 %v109_v21  ;;  %183 = vmatpush.msra.mxu1 %v140_v22  ;;  %v135_v35 = vld [vmem:[#allocation2 + $0x178] sm:$0xff]  ;;  %v100_v36 = vld [vmem:[#allocation2 + $0x60] sm:$0xff]  ;;  %v101_v37 = vld [vmem:[#allocation2 + $0x68] sm:$0xff] }
  0x19   :  { %223 = vmatpush.msra.mxu3 %v141_v23  ;;  %164 = vmatpush.msra.mxu0 %v106_v24  ;;  %v132_v38 = vld [vmem:[#allocation2 + $0x160] sm:$0xff]  ;;  %v133_v39 = vld [vmem:[#allocation2 + $0x168] sm:$0xff]  ;;  %v98_v40 = vld [vmem:[#allocation2 + $0x50] sm:$0xff] }
  0x1a   :  { %204 = vmatpush.msra.mxu2 %v107_v25  ;;  %184 = vmatpush.msra.mxu1 %v138_v26  ;;  %v99_v41 = vld [vmem:[#allocation2 + $0x58] sm:$0xff]  ;;  %v130_v42 = vld [vmem:[#allocation2 + $0x150] sm:$0xff]  ;;  %v96_v44 = vld [vmem:[#allocation2 + $0x40] sm:$0xff] }
  0x1b   :  { %224 = vmatpush.msra.mxu3 %v139_v27  ;;  %165 = vmatpush.msra.mxu0 %v104_v28  ;;  %v131_v43 = vld [vmem:[#allocation2 + $0x158] sm:$0xff]  ;;  %v97_v45 = vld [vmem:[#allocation2 + $0x48] sm:$0xff]  ;;  %v1359_v46 = vld [vmem:[%s1376_s0] sm:$0xff] }
  0x1c   :  { %205 = vmatpush.msra.mxu2 %v105_v29  ;;  %185 = vmatpush.msra.mxu1 %v136_v30  ;;  %v128_v47 = vld [vmem:[#allocation2 + $0x140] sm:$0xff]  ;;  %v129_v48 = vld [vmem:[#allocation2 + $0x148] sm:$0xff]  ;;  %v1206_v49 = vmul.f32 -1.442695, %v1359_v46  ;;  %v94_v51 = vld [vmem:[#allocation2 + $0x30] sm:$0xff] }
  0x1d   :  { %225 = vmatpush.msra.mxu3 %v137_v31  ;;  %166 = vmatpush.msra.mxu0 %v102_v32  ;;  %v1365_v50 = vld [vmem:[%s1376_s0 + $0x8] sm:$0xff]  ;;  %v95_v52 = vld [vmem:[#allocation2 + $0x38] sm:$0xff]  ;;  %v126_v54 = vld [vmem:[#allocation2 + $0x130] sm:$0xff] }
  0x1e   :  { %206 = vmatpush.msra.mxu2 %v103_v33  ;;  %186 = vmatpush.msra.mxu1 %v134_v34  ;;  %v1207_v53 = vmul.f32 -1.442695, %v1365_v50  ;;  %v127_v55 = vld [vmem:[#allocation2 + $0x138] sm:$0xff]  ;;  %1224 = vpow2.f32 %v1206_v49  ;;  %v92_v56 = vld [vmem:[#allocation2 + $0x20] sm:$0xff]  ;;  %v93_v57 = vld [vmem:[#allocation2 + $0x28] sm:$0xff] }
  0x1f   :  { %226 = vmatpush.msra.mxu3 %v135_v35  ;;  %167 = vmatpush.msra.mxu0 %v100_v36  ;;  %v124_v58 = vld [vmem:[#allocation2 + $0x120] sm:$0xff]  ;;  %v125_v59 = vld [vmem:[#allocation2 + $0x128] sm:$0xff]  ;;  %v90_v60 = vld [vmem:[#allocation2 + $0x10] sm:$0xff] }
  0x20   :  { %207 = vmatpush.msra.mxu2 %v101_v37  ;;  %187 = vmatpush.msra.mxu1 %v132_v38  ;;  %1226 = vpow2.f32 %v1207_v53  ;;  %v91_v61 = vld [vmem:[#allocation2 + $0x18] sm:$0xff]  ;;  %v122_v62 = vld [vmem:[#allocation2 + $0x110] sm:$0xff]  ;;  %v88_v0 = vld [vmem:[#allocation2] sm:$0xff] }
  0x21   :  { %227 = vmatpush.msra.mxu3 %v133_v39  ;;  %168 = vmatpush.msra.mxu0 %v98_v40  ;;  %v123_v63 = vld [vmem:[#allocation2 + $0x118] sm:$0xff]  ;;  %v89_v1 = vld [vmem:[#allocation2 + $0x8] sm:$0xff]  ;;  %v120_v3 = vld [vmem:[#allocation2 + $0x100] sm:$0xff] }
  0x22   :  { %208 = vmatpush.msra.mxu2 %v99_v41  ;;  %188 = vmatpush.msra.mxu1 %v130_v42  ;;  %v121_v4 = vld [vmem:[#allocation2 + $0x108] sm:$0xff]  ;;  %v309_v30 = vld [vmem:[#allocation2 + $0x2f0] sm:$0xff]  ;;  %v310_v31 = vld [vmem:[#allocation2 + $0x2f8] sm:$0xff] }
  0x23   :  { %228 = vmatpush.msra.mxu3 %v131_v43  ;;  %169 = vmatpush.msra.mxu0 %v96_v44  ;;  %v307_v32 = vld [vmem:[#allocation2 + $0x2e0] sm:$0xff]  ;;  %v308_v33 = vld [vmem:[#allocation2 + $0x2e8] sm:$0xff]  ;;  %v305_v34 = vld [vmem:[#allocation2 + $0x2d0] sm:$0xff] }
  0x24   :  { %209 = vmatpush.msra.mxu2 %v97_v45  ;;  %189 = vmatpush.msra.mxu1 %v128_v47  ;;  %v1225_v2 = vpop.eup %1224  ;;  %v306_v35 = vld [vmem:[#allocation2 + $0x2d8] sm:$0xff]  ;;  %v303_v36 = vld [vmem:[#allocation2 + $0x2c0] sm:$0xff]  ;;  %v341_v37 = vld [vmem:[#allocation2 + $0x3f0] sm:$0xff] }
  0x25   :  { %229 = vmatpush.msra.mxu3 %v129_v48  ;;  %170 = vmatpush.msra.mxu0 %v94_v51  ;;  %v54_v6 = vadd.f32 1.0, %v1225_v2  ;;  %v304_v38 = vld [vmem:[#allocation2 + $0x2c8] sm:$0xff]  ;;  %v342_v39 = vld [vmem:[#allocation2 + $0x3f8] sm:$0xff]  ;;  %v301_v40 = vld [vmem:[#allocation2 + $0x2b0] sm:$0xff] }
  0x26   :  { %210 = vmatpush.msra.mxu2 %v95_v52  ;;  %190 = vmatpush.msra.mxu1 %v126_v54  ;;  %v1227_v5 = vpop.eup %1226  ;;  %v339_v41 = vld [vmem:[#allocation2 + $0x3e0] sm:$0xff]  ;;  %v302_v42 = vld [vmem:[#allocation2 + $0x2b8] sm:$0xff]  ;;  %v340_v43 = vld [vmem:[#allocation2 + $0x3e8] sm:$0xff] }
  0x27   :  { %230 = vmatpush.msra.mxu3 %v127_v55  ;;  %171 = vmatpush.msra.mxu0 %v92_v56  ;;  %v55_v7 = vadd.f32 1.0, %v1227_v5  ;;  %1228 = vrcp.f32 %v54_v6  ;;  %vm61_vm0 = vweird.f32 %v54_v6  ;;  %v67_v11 = vand.u32 2147483648, %v54_v6  ;;  %v299_v44 = vld [vmem:[#allocation2 + $0x2a0] sm:$0xff]  ;;  %v337_v45 = vld [vmem:[#allocation2 + $0x3d0] sm:$0xff]  ;;  %v338_v47 = vld [vmem:[#allocation2 + $0x3d8] sm:$0xff] }
  0x28   :  { %211 = vmatpush.msra.mxu2 %v93_v57  ;;  %191 = vmatpush.msra.mxu1 %v124_v58  ;;  %v65_v14 = vand.u32 2147483647, %v54_v6  ;;  %v297_v48 = vld [vmem:[#allocation2 + $0x290] sm:$0xff]  ;;  %v335_v49 = vld [vmem:[#allocation2 + $0x3c0] sm:$0xff]  ;;  %v336_v51 = vld [vmem:[#allocation2 + $0x3c8] sm:$0xff] }
  0x29   :  { %231 = vmatpush.msra.mxu3 %v125_v59  ;;  %172 = vmatpush.msra.mxu0 %v90_v60  ;;  %1230 = vrcp.f32 %v55_v7  ;;  %v82_v15 = vand.u32 2147483648, %v55_v7  ;;  %vm76_vm2 = vweird.f32 %v55_v7  ;;  %v80_v17 = vand.u32 2147483647, %v55_v7  ;;  %v295_v52 = vld [vmem:[#allocation2 + $0x280] sm:$0xff]  ;;  %v333_v53 = vld [vmem:[#allocation2 + $0x3b0] sm:$0xff]  ;;  %v296_v54 = vld [vmem:[#allocation2 + $0x288] sm:$0xff] }
  0x2a   :  { %212 = vmatpush.msra.mxu2 %v91_v61  ;;  %192 = vmatpush.msra.mxu1 %v122_v62  ;;  %v68_v19 = vor.u32 1.1754944e-38, %v67_v11  ;;  %vm66_vm5 = vcmp.eq.f32.partialorder %v65_v14, 8.507059e+37  ;;  %v334_v55 = vld [vmem:[#allocation2 + $0x3b8] sm:$0xff]  ;;  %v293_v56 = vld [vmem:[#allocation2 + $0x270] sm:$0xff]  ;;  %v331_v57 = vld [vmem:[#allocation2 + $0x3a0] sm:$0xff] }
  0x2b   :  { %232 = vmatpush.msra.mxu3 %v123_v63  ;;  %173 = vmatpush.msra.mxu0 %v88_v0  ;;  %v83_v22 = vor.u32 1.1754944e-38, %v82_v15  ;;  %vm81_vm7 = vcmp.eq.f32.partialorder %v80_v17, 8.507059e+37  ;;  %v294_v58 = vld [vmem:[#allocation2 + $0x278] sm:$0xff]  ;;  %v332_v59 = vld [vmem:[#allocation2 + $0x3a8] sm:$0xff]  ;;  %v291_v60 = vld [vmem:[#allocation2 + $0x260] sm:$0xff] }
  0x2c   :  { %213 = vmatpush.msra.mxu2 %v89_v1  ;;  %193 = vmatpush.msra.mxu1 %v120_v3  ;;  %v329_v61 = vld [vmem:[#allocation2 + $0x390] sm:$0xff]  ;;  %v292_v62 = vld [vmem:[#allocation2 + $0x268] sm:$0xff]  ;;  %v330_v63 = vld [vmem:[#allocation2 + $0x398] sm:$0xff] }
  0x2d   :  { %233 = vmatpush.msra.mxu3 %v121_v4  ;;  %v1229_v8 = vpop.eup %1228  ;;  %350 = vmatpush.msrb.mxu0 %v309_v30  ;;  %v289_v0 = vld [vmem:[#allocation2 + $0x250] sm:$0xff]  ;;  %v327_v1 = vld [vmem:[#allocation2 + $0x380] sm:$0xff]  ;;  %v290_v2 = vld [vmem:[#allocation2 + $0x258] sm:$0xff] }
  0x2e   :  { %v57_v10 = vmul.f32 %v1229_v8, %v54_v6  ;;  %vm62_vm1 = vweird.f32 %v1229_v8  ;;  %390 = vmatpush.msrb.mxu2 %v310_v31  ;;  %370 = vmatpush.msrb.mxu1 %v341_v37  ;;  %v328_v3 = vld [vmem:[#allocation2 + $0x388] sm:$0xff]  ;;  %v287_v4 = vld [vmem:[#allocation2 + $0x240] sm:$0xff]  ;;  %v325_v5 = vld [vmem:[#allocation2 + $0x370] sm:$0xff] }
  0x2f   :  { %v1231_v9 = vpop.eup %1230  ;;  %vm63_vm4 = vmor %vm61_vm0, %vm62_vm1  ;;  %351 = vmatpush.msrb.mxu0 %v307_v32  ;;  %410 = vmatpush.msrb.mxu3 %v342_v39  ;;  %v288_v6 = vld [vmem:[#allocation2 + $0x248] sm:$0xff]  ;;  %v286_v11 = vld [vmem:[#allocation2 + $0x238] sm:$0xff] }
  0x30   :  { %v72_v12 = vmul.f32 %v1231_v9, %v55_v7  ;;  %v58_v13 = vsub.f32 1.0, %v57_v10  ;;  %vm77_vm3 = vweird.f32 %v1231_v9  ;;  %391 = vmatpush.msrb.mxu2 %v308_v33  ;;  %371 = vmatpush.msrb.mxu1 %v339_v41  ;;  %v152_v7 = vld [vmem:[#allocation4] sm:$0x3]  ;;  %v321_v15 = vld [vmem:[#allocation2 + $0x350] sm:$0xff]  ;;  %v322_v17 = vld [vmem:[#allocation2 + $0x358] sm:$0xff] }
  0x31   :  { %vm78_vm6 = vmor %vm76_vm2, %vm77_vm3  ;;  %352 = vmatpush.msrb.mxu0 %v305_v34  ;;  %411 = vmatpush.msrb.mxu3 %v340_v43  ;;  %v323_v10 = vld [vmem:[#allocation2 + $0x360] sm:$0xff]  ;;  %v155_v30 = vperm.slane %v152_v7, 1  ;;  %v316_v32 = vld [vmem:[#allocation2 + $0x328] sm:$0xff] }
  0x32   :  { %v73_v16 = vsub.f32 1.0, %v72_v12  ;;  %v59_v18 = vmul.f32 %v1229_v8, %v58_v13  ;;  %392 = vmatpush.msrb.mxu2 %v306_v35  ;;  %372 = vmatpush.msrb.mxu1 %v337_v45  ;;  %v324_v12 = vld [vmem:[#allocation2 + $0x368] sm:$0xff]  ;;  %v154_v13 = vperm.slane %v152_v7, 0  ;;  %v283_v14 = vld [vmem:[#allocation2 + $0x220] sm:$0xff]  ;;  %v313_v34 = vld [vmem:[#allocation2 + $0x310] sm:$0xff] }
  0x33   :  { %353 = vmatpush.msrb.mxu0 %v303_v36  ;;  %412 = vmatpush.msrb.mxu3 %v338_v47  ;;  %v315_v31 = vld [vmem:[#allocation2 + $0x320] sm:$0xff]  ;;  %v314_v35 = vld [vmem:[#allocation2 + $0x318] sm:$0xff] }
  0x34   :  { %v74_v20 = vmul.f32 %v1231_v9, %v73_v16  ;;  %v60_v21 = vadd.f32 %v1229_v8, %v59_v18  ;;  %393 = vmatpush.msrb.mxu2 %v304_v38  ;;  %373 = vmatpush.msrb.mxu1 %v335_v49  ;;  %v284_v16 = vld [vmem:[#allocation2 + $0x228] sm:$0xff]  ;;  %v281_v18 = vld [vmem:[#allocation2 + $0x210] sm:$0xff]  ;;  %v311_v39 = vld [vmem:[#allocation2 + $0x300] sm:$0xff] }
  0x35   :  { %354 = vmatpush.msrb.mxu0 %v301_v40  ;;  %413 = vmatpush.msrb.mxu3 %v336_v51  ;;  %v312_v40 = vld [vmem:[#allocation2 + $0x308] sm:$0xff]  ;;  %v499_v7 = vld [vmem:[#allocation2 + $0x4e0] sm:$0xff] }
  0x36   :  { %v75_v23 = vadd.f32 %v1231_v9, %v74_v20  ;;  %v64_v24 = vsel %vm63_vm4, %v1229_v8, %v60_v21  ;;  %394 = vmatpush.msrb.mxu2 %v302_v42  ;;  %374 = vmatpush.msrb.mxu1 %v333_v53  ;;  %v326_v8 = vld [vmem:[#allocation2 + $0x378] sm:$0xff] }
  0x37   :  { %v69_v25 = vsel %vm66_vm5, %v68_v19, %v64_v24  ;;  %355 = vmatpush.msrb.mxu0 %v299_v44  ;;  %414 = vmatpush.msrb.mxu3 %v334_v55  ;;  %v319_v19 = vld [vmem:[#allocation2 + $0x340] sm:$0xff]  ;;  %v282_v20 = vld [vmem:[#allocation2 + $0x218] sm:$0xff] }
  0x38   :  { %v79_v26 = vsel %vm78_vm6, %v1231_v9, %v75_v23  ;;  %v86_v27 = vmul.f32 %v69_v25, %v1359_v46  ;;  %v300_v46 = vld [vmem:[#allocation2 + $0x2a8] sm:$0xff]  ;;  %375 = vmatpush.msrb.mxu1 %v331_v57  ;;  %v285_v9 = vld [vmem:[#allocation2 + $0x230] sm:$0xff]  ;;  %v279_v25 = vld [vmem:[#allocation2 + $0x200] sm:$0xff] }
  0x39   :  { %v84_v28 = vsel %vm81_vm7, %v83_v22, %v79_v26  ;;  %395 = vmatpush.msrb.mxu2 %v300_v46  ;;  %356 = vmatpush.msrb.mxu0 %v297_v48  ;;  %v320_v22 = vld [vmem:[#allocation2 + $0x348] sm:$0xff]  ;;  %v317_v26 = vld [vmem:[#allocation2 + $0x330] sm:$0xff] }
  0x3a   :  { %v87_v29 = vmul.f32 %v84_v28, %v1365_v50  ;;  %174 = vmatmul.f32.vlgmr.msra.gmra.mxu0 %v86_v27  ;;  %214 = vmatmul.f32.vlgmr.msra.gmra.mxu2 %v86_v27  ;;  %v298_v50 = vld [vmem:[#allocation2 + $0x298] sm:$0xff]  ;;  %v280_v27 = vld [vmem:[#allocation2 + $0x208] sm:$0xff] }
  0x3b   :  { %396 = vmatpush.msrb.mxu2 %v298_v50  ;;  %357 = vmatpush.msrb.mxu0 %v295_v52  ;;  %v318_v28 = vld [vmem:[#allocation2 + $0x338] sm:$0xff] }
  0x3c   :  { %194 = vmatmul.f32.vlgmr.msra.gmra.mxu1 %v87_v29  ;;  %234 = vmatmul.f32.vlgmr.msra.gmra.mxu3 %v87_v29 }
  0x3d   :  { %397 = vmatpush.msrb.mxu2 %v296_v54  ;;  %358 = vmatpush.msrb.mxu0 %v293_v56 }
  0x3e   :  { %415 = vmatpush.msrb.mxu3 %v332_v59  ;;  %376 = vmatpush.msrb.mxu1 %v329_v61 }
  0x3f   :  { %398 = vmatpush.msrb.mxu2 %v294_v58  ;;  %359 = vmatpush.msrb.mxu0 %v291_v60 }
  0x40   :  { %416 = vmatpush.msrb.mxu3 %v330_v63  ;;  %377 = vmatpush.msrb.mxu1 %v327_v1 }
  0x41   :  { %399 = vmatpush.msrb.mxu2 %v292_v62  ;;  %360 = vmatpush.msrb.mxu0 %v289_v0 }
  0x42   :  { %417 = vmatpush.msrb.mxu3 %v328_v3  ;;  %378 = vmatpush.msrb.mxu1 %v325_v5  ;;  %v501_v5 = vld [vmem:[#allocation2 + $0x4f0] sm:$0xff] }
  0x43   :  { %400 = vmatpush.msrb.mxu2 %v290_v2  ;;  %361 = vmatpush.msrb.mxu0 %v287_v4 }
  0x44   :  { %418 = vmatpush.msrb.mxu3 %v326_v8  ;;  %379 = vmatpush.msrb.mxu1 %v323_v10  ;;  %v500_v8 = vld [vmem:[#allocation2 + $0x4e8] sm:$0xff]  ;;  %v498_v10 = vld [vmem:[#allocation2 + $0x4d8] sm:$0xff] }
  0x45   :  { %401 = vmatpush.msrb.mxu2 %v288_v6  ;;  %362 = vmatpush.msrb.mxu0 %v285_v9  ;;  %v502_v6 = vld [vmem:[#allocation2 + $0x4f8] sm:$0xff]  ;;  %v497_v9 = vld [vmem:[#allocation2 + $0x4d0] sm:$0xff] }
  0x46   :  { %419 = vmatpush.msrb.mxu3 %v324_v12  ;;  %380 = vmatpush.msrb.mxu1 %v321_v15  ;;  %v533_v12 = vld [vmem:[#allocation2 + $0x5f0] sm:$0xff] }
  0x47   :  { %402 = vmatpush.msrb.mxu2 %v286_v11  ;;  %363 = vmatpush.msrb.mxu0 %v283_v14  ;;  %v495_v11 = vld [vmem:[#allocation2 + $0x4c0] sm:$0xff]  ;;  %v534_v14 = vld [vmem:[#allocation2 + $0x5f8] sm:$0xff]  ;;  %v493_v15 = vld [vmem:[#allocation2 + $0x4b0] sm:$0xff] }
  0x48   :  { %420 = vmatpush.msrb.mxu3 %v322_v17  ;;  %381 = vmatpush.msrb.mxu1 %v319_v19  ;;  %v494_v17 = vld [vmem:[#allocation2 + $0x4b8] sm:$0xff]  ;;  %v491_v19 = vld [vmem:[#allocation2 + $0x4a0] sm:$0xff] }
  0x49   :  { %403 = vmatpush.msrb.mxu2 %v284_v16  ;;  %364 = vmatpush.msrb.mxu0 %v281_v18  ;;  %v531_v16 = vld [vmem:[#allocation2 + $0x5e0] sm:$0xff]  ;;  %v532_v18 = vld [vmem:[#allocation2 + $0x5e8] sm:$0xff] }
  0x4a   :  { %421 = vmatpush.msrb.mxu3 %v320_v22  ;;  %382 = vmatpush.msrb.mxu1 %v317_v26  ;;  %v530_v22 = vld [vmem:[#allocation2 + $0x5d8] sm:$0xff]  ;;  %v528_v26 = vld [vmem:[#allocation2 + $0x5c8] sm:$0xff] }
  0x4b   :  { %404 = vmatpush.msrb.mxu2 %v282_v20  ;;  %365 = vmatpush.msrb.mxu0 %v279_v25  ;;  %v529_v20 = vld [vmem:[#allocation2 + $0x5d0] sm:$0xff]  ;;  %v490_v25 = vld [vmem:[#allocation2 + $0x498] sm:$0xff] }
  0x4c   :  { %422 = vmatpush.msrb.mxu3 %v318_v28  ;;  %383 = vmatpush.msrb.mxu1 %v315_v31  ;;  %v525_v28 = vld [vmem:[#allocation2 + $0x5b0] sm:$0xff] }
  0x4d   :  { %405 = vmatpush.msrb.mxu2 %v280_v27  ;;  %542 = vmatpush.msra.mxu0 %v501_v5  ;;  %v487_v27 = vld [vmem:[#allocation2 + $0x480] sm:$0xff]  ;;  %v485_v31 = vld [vmem:[#allocation2 + $0x470] sm:$0xff] }
  0x4e   :  { %423 = vmatpush.msrb.mxu3 %v316_v32  ;;  %384 = vmatpush.msrb.mxu1 %v313_v34  ;;  %v523_v32 = vld [vmem:[#allocation2 + $0x5a0] sm:$0xff]  ;;  %v524_v34 = vld [vmem:[#allocation2 + $0x5a8] sm:$0xff] }
  0x4f   :  { %582 = vmatpush.msra.mxu2 %v502_v6  ;;  %543 = vmatpush.msra.mxu0 %v499_v7  ;;  %v507_v6 = vld [vmem:[#allocation2 + $0x520] sm:$0xff]  ;;  %v508_v7 = vld [vmem:[#allocation2 + $0x528] sm:$0xff] }
  0x50   :  { %424 = vmatpush.msrb.mxu3 %v314_v35  ;;  %385 = vmatpush.msrb.mxu1 %v311_v39  ;;  %v483_v35 = vld [vmem:[#allocation2 + $0x460] sm:$0xff]  ;;  %v481_v39 = vld [vmem:[#allocation2 + $0x450] sm:$0xff] }
  0x51   :  { %583 = vmatpush.msra.mxu2 %v500_v8  ;;  %544 = vmatpush.msra.mxu0 %v497_v9 }
  0x52   :  { %425 = vmatpush.msrb.mxu3 %v312_v40  ;;  %562 = vmatpush.msra.mxu1 %v533_v12  ;;  %v519_v40 = vld [vmem:[#allocation2 + $0x580] sm:$0xff] }
  0x53   :  { %584 = vmatpush.msra.mxu2 %v498_v10  ;;  %545 = vmatpush.msra.mxu0 %v495_v11  ;;  %v505_v10 = vld [vmem:[#allocation2 + $0x510] sm:$0xff]  ;;  %v506_v11 = vld [vmem:[#allocation2 + $0x518] sm:$0xff] }
  0x54   :  { %602 = vmatpush.msra.mxu3 %v534_v14  ;;  %563 = vmatpush.msra.mxu1 %v531_v16  ;;  %v504_v14 = vld [vmem:[#allocation2 + $0x508] sm:$0xff] }
  0x55   :  { %546 = vmatpush.msra.mxu0 %v493_v15 }
  0x56   :  { %603 = vmatpush.msra.mxu3 %v532_v18  ;;  %564 = vmatpush.msra.mxu1 %v529_v20 }
  0x57   :  { %547 = vmatpush.msra.mxu0 %v491_v19 }
  0x58   :  { %604 = vmatpush.msra.mxu3 %v530_v22 }
  0x5a   :  { %605 = vmatpush.msra.mxu3 %v528_v26 }
  0xb7   :  { %v175_v21 = vpop.f32.mrf.mxu0 }
  0xb8   :  { %v176_v23 = vadd.f32 %v175_v21, %v154_v13  ;;  %v496_v13 = vld [vmem:[#allocation2 + $0x4c8] sm:$0xff] }
  0xb9   :  { %v195_v24 = vpop.f32.mrf.mxu1  ;;  %585 = vmatpush.msra.mxu2 %v496_v13  ;;  %v492_v21 = vld [vmem:[#allocation2 + $0x4a8] sm:$0xff]  ;;  %v503_v13 = vld [vmem:[#allocation2 + $0x500] sm:$0xff] }
  0xba   :  { %v196_v29 = vadd.f32 %v195_v24, %v176_v23  ;;  %v489_v23 = vld [vmem:[#allocation2 + $0x490] sm:$0xff]  ;;  %v527_v24 = vld [vmem:[#allocation2 + $0x5c0] sm:$0xff] }
  0xbb   :  { %586 = vmatpush.msra.mxu2 %v494_v17  ;;  %548 = vmatpush.msra.mxu0 %v489_v23 }
  0xbc   :  { %v1208_v33 = vmul.f32 -1.442695, %v196_v29  ;;  %565 = vmatpush.msra.mxu1 %v527_v24 }
  0xbd   :  { %v215_v36 = vpop.f32.mrf.mxu2  ;;  %587 = vmatpush.msra.mxu2 %v492_v21  ;;  %549 = vmatpush.msra.mxu0 %v487_v27 }
  0xbe   :  { %1232 = vpow2.f32 %v1208_v33  ;;  %v216_v37 = vadd.f32 %v215_v36, %v155_v30  ;;  %566 = vmatpush.msra.mxu1 %v525_v28  ;;  %v526_v30 = vld [vmem:[#allocation2 + $0x5b8] sm:$0xff]  ;;  %v521_v36 = vld [vmem:[#allocation2 + $0x590] sm:$0xff] }
  0xbf   :  { %v235_v38 = vpop.f32.mrf.mxu3  ;;  %588 = vmatpush.msra.mxu2 %v490_v25  ;;  %606 = vmatpush.msra.mxu3 %v526_v30  ;;  %v486_v33 = vld [vmem:[#allocation2 + $0x478] sm:$0xff] }
  0xc0   :  { %v236_v41 = vadd.f32 %v235_v38, %v216_v37  ;;  %550 = vmatpush.msra.mxu0 %v485_v31  ;;  %567 = vmatpush.msra.mxu1 %v523_v32  ;;  %v484_v37 = vld [vmem:[#allocation2 + $0x468] sm:$0xff]  ;;  %v522_v38 = vld [vmem:[#allocation2 + $0x598] sm:$0xff] }
  0xc1   :  { %607 = vmatpush.msra.mxu3 %v524_v34 }
  0xc2   :  { %v1209_v42 = vmul.f32 -1.442695, %v236_v41  ;;  %551 = vmatpush.msra.mxu0 %v483_v35  ;;  %568 = vmatpush.msra.mxu1 %v521_v36 }
  0xc3   :  { %608 = vmatpush.msra.mxu3 %v522_v38 }
  0xc4   :  { %v1233_v43 = vpop.eup %1232  ;;  %1234 = vpow2.f32 %v1209_v42  ;;  %552 = vmatpush.msra.mxu0 %v481_v39  ;;  %569 = vmatpush.msra.mxu1 %v519_v40  ;;  %v520_v42 = vld [vmem:[#allocation2 + $0x588] sm:$0xff] }
  0xc5   :  { %v244_v44 = vadd.f32 1.0, %v1233_v43  ;;  %609 = vmatpush.msra.mxu3 %v520_v42  ;;  %v479_v43 = vld [vmem:[#allocation2 + $0x440] sm:$0xff] }
  0xc6   :  { %553 = vmatpush.msra.mxu0 %v479_v43 }
  0xc7   :  { %1236 = vrcp.f32 %v244_v44  ;;  %v257_v50 = vand.u32 2147483648, %v244_v44  ;;  %v255_v52 = vand.u32 2147483647, %v244_v44  ;;  %vm251_vm9 = vweird.f32 %v244_v44 }
  0xc9   :  { %v258_v56 = vor.u32 1.1754944e-38, %v257_v50  ;;  %vm256_vm11 = vcmp.eq.f32.partialorder %v255_v52, 8.507059e+37  ;;  %v478_v50 = vld [vmem:[#allocation2 + $0x438] sm:$0xff] }
  0xca   :  { %v1235_v45 = vpop.eup %1234 }
  0xcb   :  { %v245_v46 = vadd.f32 1.0, %v1235_v45  ;;  %v480_v45 = vld [vmem:[#allocation2 + $0x448] sm:$0xff] }
  0xcd   :  { %v1237_v47 = vpop.eup %1236  ;;  %1238 = vrcp.f32 %v245_v46  ;;  %v272_v60 = vand.u32 2147483648, %v245_v46  ;;  %v270_v63 = vand.u32 2147483647, %v245_v46  ;;  %vm266_vm13 = vweird.f32 %v245_v46 }
  0xce   :  { %v247_v48 = vmul.f32 %v1237_v47, %v244_v44  ;;  %vm252_vm8 = vweird.f32 %v1237_v47  ;;  %v517_v44 = vld [vmem:[#allocation2 + $0x570] sm:$0xff] }
  0xcf   :  { %vm253_vm10 = vmor %vm251_vm9, %vm252_vm8  ;;  %v273_v1 = vor.u32 1.1754944e-38, %v272_v60  ;;  %vm271_vm15 = vcmp.eq.f32.partialorder %v270_v63, 8.507059e+37  ;;  %570 = vmatpush.msra.mxu1 %v517_v44  ;;  %v474_v60 = vld [vmem:[#allocation2 + $0x418] sm:$0xff]  ;;  %v471_v63 = vld [vmem:[#allocation2 + $0x400] sm:$0xff] }
  0xd0   :  { %v248_v49 = vsub.f32 1.0, %v247_v48  ;;  %v477_v48 = vld [vmem:[#allocation2 + $0x430] sm:$0xff] }
  0xd1   :  { %554 = vmatpush.msra.mxu0 %v477_v48  ;;  %v693_v44 = vld [vmem:[#allocation2 + $0x6f0] sm:$0xff] }
  0xd2   :  { %v249_v51 = vmul.f32 %v1237_v47, %v248_v49  ;;  %v515_v49 = vld [vmem:[#allocation2 + $0x560] sm:$0xff]  ;;  %v689_v48 = vld [vmem:[#allocation2 + $0x6d0] sm:$0xff] }
  0xd3   :  { %v1239_v53 = vpop.eup %1238  ;;  %571 = vmatpush.msra.mxu1 %v515_v49  ;;  %v690_v49 = vld [vmem:[#allocation2 + $0x6d8] sm:$0xff] }
  0xd4   :  { %v250_v54 = vadd.f32 %v1237_v47, %v249_v51  ;;  %v262_v55 = vmul.f32 %v1239_v53, %v245_v46  ;;  %vm267_vm12 = vweird.f32 %v1239_v53  ;;  %v344_v46 = vld [vmem:[#allocation4 + $0x2] sm:$0x3]  ;;  %v516_v51 = vld [vmem:[#allocation2 + $0x568] sm:$0xff] }
  0xd5   :  { %vm268_vm14 = vmor %vm266_vm13, %vm267_vm12  ;;  %v346_v52 = vperm.slane %v344_v46, 0  ;;  %v347_v5 = vperm.slane %v344_v46, 1  ;;  %v691_v46 = vld [vmem:[#allocation2 + $0x6e0] sm:$0xff] }
  0xd6   :  { %v254_v57 = vsel %vm253_vm10, %v1237_v47, %v250_v54  ;;  %v263_v58 = vsub.f32 1.0, %v262_v55  ;;  %v518_v47 = vld [vmem:[#allocation2 + $0x578] sm:$0xff]  ;;  %v513_v54 = vld [vmem:[#allocation2 + $0x550] sm:$0xff]  ;;  %v476_v55 = vld [vmem:[#allocation2 + $0x428] sm:$0xff] }
  0xd7   :  { %v259_v59 = vsel %vm256_vm11, %v258_v56, %v254_v57  ;;  %610 = vmatpush.msra.mxu3 %v518_v47  ;;  %572 = vmatpush.msra.mxu1 %v513_v54  ;;  %v514_v57 = vld [vmem:[#allocation2 + $0x558] sm:$0xff]  ;;  %v692_v47 = vld [vmem:[#allocation2 + $0x6e8] sm:$0xff]  ;;  %v685_v54 = vld [vmem:[#allocation2 + $0x6b0] sm:$0xff] }
  0xd8   :  { %v276_v61 = vmul.f32 %v259_v59, %v196_v29  ;;  %v264_v62 = vmul.f32 %v1239_v53, %v263_v58  ;;  %v488_v29 = vld [vmem:[#allocation2 + $0x488] sm:$0xff]  ;;  %v473_v58 = vld [vmem:[#allocation2 + $0x410] sm:$0xff]  ;;  %v511_v59 = vld [vmem:[#allocation2 + $0x540] sm:$0xff] }
  0xd9   :  { %589 = vmatpush.msra.mxu2 %v488_v29  ;;  %611 = vmatpush.msra.mxu3 %v516_v51  ;;  %v725_v51 = vld [vmem:[#allocation2 + $0x7f0] sm:$0xff] }
  0xda   :  { %v265_v0 = vadd.f32 %v1239_v53, %v264_v62  ;;  %366 = vmatmul.f32.vlgmr.msrb.gmra.mxu0 %v276_v61  ;;  %406 = vmatmul.f32.vlgmr.msrb.gmra.mxu2 %v276_v61  ;;  %v512_v61 = vld [vmem:[#allocation2 + $0x548] sm:$0xff] }
  0xdb   :  { %590 = vmatpush.msra.mxu2 %v486_v33  ;;  %612 = vmatpush.msra.mxu3 %v514_v57  ;;  %v724_v57 = vld [vmem:[#allocation2 + $0x7e8] sm:$0xff] }
  0xdc   :  { %v269_v2 = vsel %vm268_vm14, %v1239_v53, %v265_v0  ;;  %v475_v53 = vld [vmem:[#allocation2 + $0x420] sm:$0xff]  ;;  %573 = vmatpush.msra.mxu1 %v511_v59  ;;  %v509_v0 = vld [vmem:[#allocation2 + $0x530] sm:$0xff] }
  0xdd   :  { %v274_v3 = vsel %vm271_vm15, %v273_v1, %v269_v2  ;;  %591 = vmatpush.msra.mxu2 %v484_v37  ;;  %555 = vmatpush.msra.mxu0 %v475_v53  ;;  %v472_v1 = vld [vmem:[#allocation2 + $0x408] sm:$0xff]  ;;  %v726_v53 = vld [vmem:[#allocation2 + $0x7f8] sm:$0xff]  ;;  %v721_v59 = vld [vmem:[#allocation2 + $0x7d0] sm:$0xff] }
  0xde   :  { %v277_v4 = vmul.f32 %v274_v3, %v236_v41  ;;  %v482_v41 = vld [vmem:[#allocation2 + $0x458] sm:$0xff]  ;;  %613 = vmatpush.msra.mxu3 %v512_v61  ;;  %574 = vmatpush.msra.mxu1 %v509_v0 }
  0xdf   :  { %592 = vmatpush.msra.mxu2 %v482_v41  ;;  %556 = vmatpush.msra.mxu0 %v473_v58  ;;  %v510_v3 = vld [vmem:[#allocation2 + $0x538] sm:$0xff]  ;;  %v683_v58 = vld [vmem:[#allocation2 + $0x6a0] sm:$0xff] }
  0xe0   :  { %386 = vmatmul.f32.vlgmr.msrb.gmra.mxu1 %v277_v4  ;;  %426 = vmatmul.f32.vlgmr.msrb.gmra.mxu3 %v277_v4  ;;  %v722_v61 = vld [vmem:[#allocation2 + $0x7d8] sm:$0xff] }
  0xe1   :  { %593 = vmatpush.msra.mxu2 %v480_v45  ;;  %557 = vmatpush.msra.mxu0 %v471_v63  ;;  %v694_v45 = vld [vmem:[#allocation2 + $0x6f8] sm:$0xff]  ;;  %v719_v63 = vld [vmem:[#allocation2 + $0x7c0] sm:$0xff] }
  0xe2   :  { %614 = vmatpush.msra.mxu3 %v510_v3  ;;  %575 = vmatpush.msra.mxu1 %v507_v6  ;;  %v682_v0 = vld [vmem:[#allocation2 + $0x698] sm:$0xff]  ;;  %v717_v3 = vld [vmem:[#allocation2 + $0x7b0] sm:$0xff] }
  0xe3   :  { %594 = vmatpush.msra.mxu2 %v478_v50  ;;  %734 = vmatpush.msrb.mxu0 %v693_v44  ;;  %v687_v50 = vld [vmem:[#allocation2 + $0x6c0] sm:$0xff]  ;;  %v677_v6 = vld [vmem:[#allocation2 + $0x670] sm:$0xff] }
  0xe4   :  { %615 = vmatpush.msra.mxu3 %v508_v7  ;;  %576 = vmatpush.msra.mxu1 %v505_v10  ;;  %v715_v7 = vld [vmem:[#allocation2 + $0x7a0] sm:$0xff] }
  0xe5   :  { %595 = vmatpush.msra.mxu2 %v476_v55  ;;  %735 = vmatpush.msrb.mxu0 %v691_v46  ;;  %v723_v55 = vld [vmem:[#allocation2 + $0x7e0] sm:$0xff]  ;;  %v700_v46 = vld [vmem:[#allocation2 + $0x728] sm:$0xff] }
  0xe6   :  { %616 = vmatpush.msra.mxu3 %v506_v11  ;;  %577 = vmatpush.msra.mxu1 %v503_v13  ;;  %v675_v10 = vld [vmem:[#allocation2 + $0x660] sm:$0xff]  ;;  %v713_v11 = vld [vmem:[#allocation2 + $0x790] sm:$0xff]  ;;  %v714_v13 = vld [vmem:[#allocation2 + $0x798] sm:$0xff] }
  0xe7   :  { %596 = vmatpush.msra.mxu2 %v474_v60  ;;  %736 = vmatpush.msrb.mxu0 %v689_v48  ;;  %v684_v60 = vld [vmem:[#allocation2 + $0x6a8] sm:$0xff] }
  0xe8   :  { %617 = vmatpush.msra.mxu3 %v504_v14  ;;  %754 = vmatpush.msrb.mxu1 %v725_v51  ;;  %v673_v14 = vld [vmem:[#allocation2 + $0x650] sm:$0xff] }
  0xe9   :  { %597 = vmatpush.msra.mxu2 %v472_v1  ;;  %737 = vmatpush.msrb.mxu0 %v687_v50  ;;  %v720_v1 = vld [vmem:[#allocation2 + $0x7c8] sm:$0xff]  ;;  %v698_v50 = vld [vmem:[#allocation2 + $0x718] sm:$0xff] }
  0xea   :  { %794 = vmatpush.msrb.mxu3 %v726_v53  ;;  %755 = vmatpush.msrb.mxu1 %v723_v55  ;;  %v696_v53 = vld [vmem:[#allocation2 + $0x708] sm:$0xff] }
  0xeb   :  { %774 = vmatpush.msrb.mxu2 %v694_v45  ;;  %738 = vmatpush.msrb.mxu0 %v685_v54  ;;  %v699_v45 = vld [vmem:[#allocation2 + $0x720] sm:$0xff] }
  0xec   :  { %795 = vmatpush.msrb.mxu3 %v724_v57  ;;  %756 = vmatpush.msrb.mxu1 %v721_v59 }
  0xed   :  { %775 = vmatpush.msrb.mxu2 %v692_v47  ;;  %739 = vmatpush.msrb.mxu0 %v683_v58 }
  0xee   :  { %796 = vmatpush.msrb.mxu3 %v722_v61  ;;  %757 = vmatpush.msrb.mxu1 %v719_v63 }
  0xef   :  { %776 = vmatpush.msrb.mxu2 %v690_v49  ;;  %v697_v49 = vld [vmem:[#allocation2 + $0x710] sm:$0xff] }
  0xf0   :  { %797 = vmatpush.msrb.mxu3 %v720_v1  ;;  %758 = vmatpush.msrb.mxu1 %v717_v3 }
  0xf2   :  { %759 = vmatpush.msrb.mxu1 %v715_v7 }
  0xf4   :  { %760 = vmatpush.msrb.mxu1 %v713_v11 }
 0x157   :  { %v367_v56 = vpop.f32.mrf.mxu0 }
 0x158   :  { %v368_v62 = vadd.f32 %v367_v56, %v346_v52  ;;  %v688_v52 = vld [vmem:[#allocation2 + $0x6c8] sm:$0xff]  ;;  %v686_v56 = vld [vmem:[#allocation2 + $0x6b8] sm:$0xff] }
 0x159   :  { %777 = vmatpush.msrb.mxu2 %v688_v52  ;;  %v695_v52 = vld [vmem:[#allocation2 + $0x700] sm:$0xff] }
 0x15b   :  { %778 = vmatpush.msrb.mxu2 %v686_v56 }
 0x15d   :  { %v387_v2 = vpop.f32.mrf.mxu1  ;;  %v407_v8 = vpop.f32.mrf.mxu2  ;;  %779 = vmatpush.msrb.mxu2 %v684_v60 }
 0x15e   :  { %v388_v4 = vadd.f32 %v387_v2, %v368_v62  ;;  %v408_v12 = vadd.f32 %v407_v8, %v347_v5  ;;  %v681_v62 = vld [vmem:[#allocation2 + $0x690] sm:$0xff]  ;;  %v679_v2 = vld [vmem:[#allocation2 + $0x680] sm:$0xff]  ;;  %v718_v5 = vld [vmem:[#allocation2 + $0x7b8] sm:$0xff] }
 0x15f   :  { %740 = vmatpush.msrb.mxu0 %v681_v62  ;;  %780 = vmatpush.msrb.mxu2 %v682_v0  ;;  %v678_v8 = vld [vmem:[#allocation2 + $0x678] sm:$0xff] }
 0x160   :  { %v1210_v9 = vmul.f32 -1.442695, %v388_v4  ;;  %798 = vmatpush.msrb.mxu3 %v718_v5 }
 0x161   :  { %741 = vmatpush.msrb.mxu0 %v679_v2 }
 0x162   :  { %1240 = vpow2.f32 %v1210_v9  ;;  %v716_v9 = vld [vmem:[#allocation2 + $0x7a8] sm:$0xff] }
 0x163   :  { %v427_v15 = vpop.f32.mrf.mxu3  ;;  %742 = vmatpush.msrb.mxu0 %v677_v6  ;;  %799 = vmatpush.msrb.mxu3 %v716_v9 }
 0x164   :  { %v428_v16 = vadd.f32 %v427_v15, %v408_v12  ;;  %v676_v12 = vld [vmem:[#allocation2 + $0x668] sm:$0xff]  ;;  %v711_v15 = vld [vmem:[#allocation2 + $0x780] sm:$0xff] }
 0x165   :  { %743 = vmatpush.msrb.mxu0 %v675_v10  ;;  %800 = vmatpush.msrb.mxu3 %v714_v13 }
 0x166   :  { %v1211_v17 = vmul.f32 -1.442695, %v428_v16  ;;  %761 = vmatpush.msrb.mxu1 %v711_v15 }
 0x167   :  { %744 = vmatpush.msrb.mxu0 %v673_v14 }
 0x168   :  { %v1241_v18 = vpop.eup %1240  ;;  %1242 = vpow2.f32 %v1211_v17  ;;  %v712_v17 = vld [vmem:[#allocation2 + $0x788] sm:$0xff] }
 0x169   :  { %v436_v19 = vadd.f32 1.0, %v1241_v18  ;;  %801 = vmatpush.msrb.mxu3 %v712_v17  ;;  %v671_v18 = vld [vmem:[#allocation2 + $0x640] sm:$0xff] }
 0x16a   :  { %745 = vmatpush.msrb.mxu0 %v671_v18 }
 0x16b   :  { %1244 = vrcp.f32 %v436_v19  ;;  %v449_v25 = vand.u32 2147483648, %v436_v19  ;;  %v447_v27 = vand.u32 2147483647, %v436_v19  ;;  %vm443_vm1 = vweird.f32 %v436_v19 }
 0x16d   :  { %v450_v31 = vor.u32 1.1754944e-38, %v449_v25  ;;  %vm448_vm3 = vcmp.eq.f32.partialorder %v447_v27, 8.507059e+37  ;;  %v670_v25 = vld [vmem:[#allocation2 + $0x638] sm:$0xff] }
 0x16e   :  { %v1243_v20 = vpop.eup %1242 }
 0x16f   :  { %v437_v21 = vadd.f32 1.0, %v1243_v20  ;;  %v672_v20 = vld [vmem:[#allocation2 + $0x648] sm:$0xff] }
 0x171   :  { %v1245_v22 = vpop.eup %1244  ;;  %1246 = vrcp.f32 %v437_v21  ;;  %v464_v35 = vand.u32 2147483648, %v437_v21  ;;  %v462_v38 = vand.u32 2147483647, %v437_v21  ;;  %vm458_vm5 = vweird.f32 %v437_v21 }
 0x172   :  { %v439_v23 = vmul.f32 %v1245_v22, %v436_v19  ;;  %vm444_vm0 = vweird.f32 %v1245_v22  ;;  %v709_v19 = vld [vmem:[#allocation2 + $0x770] sm:$0xff] }
 0x173   :  { %vm445_vm2 = vmor %vm443_vm1, %vm444_vm0  ;;  %v465_v40 = vor.u32 1.1754944e-38, %v464_v35  ;;  %vm463_vm7 = vcmp.eq.f32.partialorder %v462_v38, 8.507059e+37  ;;  %762 = vmatpush.msrb.mxu1 %v709_v19  ;;  %v666_v35 = vld [vmem:[#allocation2 + $0x618] sm:$0xff]  ;;  %v663_v38 = vld [vmem:[#allocation2 + $0x600] sm:$0xff] }
 0x174   :  { %v440_v24 = vsub.f32 1.0, %v439_v23  ;;  %v669_v23 = vld [vmem:[#allocation2 + $0x630] sm:$0xff] }
 0x175   :  { %746 = vmatpush.msrb.mxu0 %v669_v23  ;;  %v885_v19 = vld [vmem:[#allocation2 + $0x8f0] sm:$0xff] }
 0x176   :  { %v441_v26 = vmul.f32 %v1245_v22, %v440_v24  ;;  %v707_v24 = vld [vmem:[#allocation2 + $0x760] sm:$0xff]  ;;  %v881_v23 = vld [vmem:[#allocation2 + $0x8d0] sm:$0xff] }
 0x177   :  { %v1247_v28 = vpop.eup %1246  ;;  %763 = vmatpush.msrb.mxu1 %v707_v24  ;;  %v882_v24 = vld [vmem:[#allocation2 + $0x8d8] sm:$0xff] }
 0x178   :  { %v442_v29 = vadd.f32 %v1245_v22, %v441_v26  ;;  %v454_v30 = vmul.f32 %v1247_v28, %v437_v21  ;;  %vm459_vm4 = vweird.f32 %v1247_v28  ;;  %v536_v21 = vld [vmem:[#allocation4 + $0x4] sm:$0x3]  ;;  %v708_v26 = vld [vmem:[#allocation2 + $0x768] sm:$0xff] }
 0x179   :  { %vm460_vm6 = vmor %vm458_vm5, %vm459_vm4  ;;  %v538_v27 = vperm.slane %v536_v21, 0  ;;  %v539_v44 = vperm.slane %v536_v21, 1  ;;  %v883_v21 = vld [vmem:[#allocation2 + $0x8e0] sm:$0xff] }
 0x17a   :  { %v446_v32 = vsel %vm445_vm2, %v1245_v22, %v442_v29  ;;  %v455_v33 = vsub.f32 1.0, %v454_v30  ;;  %v710_v22 = vld [vmem:[#allocation2 + $0x778] sm:$0xff]  ;;  %v705_v29 = vld [vmem:[#allocation2 + $0x750] sm:$0xff]  ;;  %v668_v30 = vld [vmem:[#allocation2 + $0x628] sm:$0xff] }
 0x17b   :  { %v451_v34 = vsel %vm448_vm3, %v450_v31, %v446_v32  ;;  %802 = vmatpush.msrb.mxu3 %v710_v22  ;;  %764 = vmatpush.msrb.mxu1 %v705_v29  ;;  %v706_v32 = vld [vmem:[#allocation2 + $0x758] sm:$0xff]  ;;  %v884_v22 = vld [vmem:[#allocation2 + $0x8e8] sm:$0xff]  ;;  %v877_v29 = vld [vmem:[#allocation2 + $0x8b0] sm:$0xff] }
 0x17c   :  { %v468_v36 = vmul.f32 %v451_v34, %v388_v4  ;;  %v456_v37 = vmul.f32 %v1247_v28, %v455_v33  ;;  %v680_v4 = vld [vmem:[#allocation2 + $0x688] sm:$0xff]  ;;  %v665_v33 = vld [vmem:[#allocation2 + $0x610] sm:$0xff]  ;;  %v703_v34 = vld [vmem:[#allocation2 + $0x740] sm:$0xff] }
 0x17d   :  { %781 = vmatpush.msrb.mxu2 %v680_v4  ;;  %803 = vmatpush.msrb.mxu3 %v708_v26  ;;  %v917_v26 = vld [vmem:[#allocation2 + $0x9f0] sm:$0xff] }
 0x17e   :  { %v457_v39 = vadd.f32 %v1247_v28, %v456_v37  ;;  %558 = vmatmul.f32.vlgmr.msra.gmra.mxu0 %v468_v36  ;;  %598 = vmatmul.f32.vlgmr.msra.gmra.mxu2 %v468_v36  ;;  %v704_v36 = vld [vmem:[#allocation2 + $0x748] sm:$0xff] }
 0x17f   :  { %782 = vmatpush.msrb.mxu2 %v678_v8  ;;  %804 = vmatpush.msrb.mxu3 %v706_v32  ;;  %v916_v32 = vld [vmem:[#allocation2 + $0x9e8] sm:$0xff] }
 0x180   :  { %v461_v41 = vsel %vm460_vm6, %v1247_v28, %v457_v39  ;;  %v667_v28 = vld [vmem:[#allocation2 + $0x620] sm:$0xff]  ;;  %765 = vmatpush.msrb.mxu1 %v703_v34  ;;  %v701_v39 = vld [vmem:[#allocation2 + $0x730] sm:$0xff] }
 0x181   :  { %v466_v42 = vsel %vm463_vm7, %v465_v40, %v461_v41  ;;  %783 = vmatpush.msrb.mxu2 %v676_v12  ;;  %747 = vmatpush.msrb.mxu0 %v667_v28  ;;  %v664_v40 = vld [vmem:[#allocation2 + $0x608] sm:$0xff]  ;;  %v918_v28 = vld [vmem:[#allocation2 + $0x9f8] sm:$0xff]  ;;  %v913_v34 = vld [vmem:[#allocation2 + $0x9d0] sm:$0xff] }
 0x182   :  { %v469_v43 = vmul.f32 %v466_v42, %v428_v16  ;;  %v674_v16 = vld [vmem:[#allocation2 + $0x658] sm:$0xff]  ;;  %805 = vmatpush.msrb.mxu3 %v704_v36  ;;  %766 = vmatpush.msrb.mxu1 %v701_v39 }
 0x183   :  { %784 = vmatpush.msrb.mxu2 %v674_v16  ;;  %748 = vmatpush.msrb.mxu0 %v665_v33  ;;  %v702_v42 = vld [vmem:[#allocation2 + $0x738] sm:$0xff]  ;;  %v875_v33 = vld [vmem:[#allocation2 + $0x8a0] sm:$0xff] }
 0x184   :  { %578 = vmatmul.f32.vlgmr.msra.gmra.mxu1 %v469_v43  ;;  %618 = vmatmul.f32.vlgmr.msra.gmra.mxu3 %v469_v43  ;;  %v914_v36 = vld [vmem:[#allocation2 + $0x9d8] sm:$0xff] }
 0x185   :  { %785 = vmatpush.msrb.mxu2 %v672_v20  ;;  %749 = vmatpush.msrb.mxu0 %v663_v38  ;;  %v886_v20 = vld [vmem:[#allocation2 + $0x8f8] sm:$0xff]  ;;  %v911_v38 = vld [vmem:[#allocation2 + $0x9c0] sm:$0xff] }
 0x186   :  { %806 = vmatpush.msrb.mxu3 %v702_v42  ;;  %767 = vmatpush.msrb.mxu1 %v699_v45  ;;  %v874_v39 = vld [vmem:[#allocation2 + $0x898] sm:$0xff]  ;;  %v909_v42 = vld [vmem:[#allocation2 + $0x9b0] sm:$0xff] }
 0x187   :  { %786 = vmatpush.msrb.mxu2 %v670_v25  ;;  %926 = vmatpush.msra.mxu0 %v885_v19  ;;  %v879_v25 = vld [vmem:[#allocation2 + $0x8c0] sm:$0xff]  ;;  %v869_v45 = vld [vmem:[#allocation2 + $0x870] sm:$0xff] }
 0x188   :  { %807 = vmatpush.msrb.mxu3 %v700_v46  ;;  %768 = vmatpush.msrb.mxu1 %v697_v49  ;;  %v907_v46 = vld [vmem:[#allocation2 + $0x9a0] sm:$0xff] }
 0x189   :  { %787 = vmatpush.msrb.mxu2 %v668_v30  ;;  %927 = vmatpush.msra.mxu0 %v883_v21  ;;  %v915_v30 = vld [vmem:[#allocation2 + $0x9e0] sm:$0xff]  ;;  %v892_v21 = vld [vmem:[#allocation2 + $0x928] sm:$0xff] }
 0x18a   :  { %808 = vmatpush.msrb.mxu3 %v698_v50  ;;  %769 = vmatpush.msrb.mxu1 %v695_v52  ;;  %v867_v49 = vld [vmem:[#allocation2 + $0x860] sm:$0xff]  ;;  %v905_v50 = vld [vmem:[#allocation2 + $0x990] sm:$0xff]  ;;  %v906_v52 = vld [vmem:[#allocation2 + $0x998] sm:$0xff] }
 0x18b   :  { %788 = vmatpush.msrb.mxu2 %v666_v35  ;;  %928 = vmatpush.msra.mxu0 %v881_v23  ;;  %v876_v35 = vld [vmem:[#allocation2 + $0x8a8] sm:$0xff] }
 0x18c   :  { %809 = vmatpush.msrb.mxu3 %v696_v53  ;;  %946 = vmatpush.msra.mxu1 %v917_v26  ;;  %v865_v53 = vld [vmem:[#allocation2 + $0x850] sm:$0xff] }
 0x18d   :  { %789 = vmatpush.msrb.mxu2 %v664_v40  ;;  %929 = vmatpush.msra.mxu0 %v879_v25  ;;  %v912_v40 = vld [vmem:[#allocation2 + $0x9c8] sm:$0xff]  ;;  %v890_v25 = vld [vmem:[#allocation2 + $0x918] sm:$0xff] }
 0x18e   :  { %986 = vmatpush.msra.mxu3 %v918_v28  ;;  %947 = vmatpush.msra.mxu1 %v915_v30  ;;  %v888_v28 = vld [vmem:[#allocation2 + $0x908] sm:$0xff] }
 0x18f   :  { %966 = vmatpush.msra.mxu2 %v886_v20  ;;  %930 = vmatpush.msra.mxu0 %v877_v29  ;;  %v891_v20 = vld [vmem:[#allocation2 + $0x920] sm:$0xff] }
 0x190   :  { %987 = vmatpush.msra.mxu3 %v916_v32  ;;  %948 = vmatpush.msra.mxu1 %v913_v34 }
 0x191   :  { %967 = vmatpush.msra.mxu2 %v884_v22  ;;  %931 = vmatpush.msra.mxu0 %v875_v33 }
 0x192   :  { %988 = vmatpush.msra.mxu3 %v914_v36  ;;  %949 = vmatpush.msra.mxu1 %v911_v38 }
 0x193   :  { %968 = vmatpush.msra.mxu2 %v882_v24  ;;  %v889_v24 = vld [vmem:[#allocation2 + $0x910] sm:$0xff] }
 0x194   :  { %989 = vmatpush.msra.mxu3 %v912_v40  ;;  %950 = vmatpush.msra.mxu1 %v909_v42 }
 0x196   :  { %951 = vmatpush.msra.mxu1 %v907_v46 }
 0x198   :  { %952 = vmatpush.msra.mxu1 %v905_v50 }
 0x1fb   :  { %v559_v31 = vpop.f32.mrf.mxu0 }
 0x1fc   :  { %v560_v37 = vadd.f32 %v559_v31, %v538_v27  ;;  %v880_v27 = vld [vmem:[#allocation2 + $0x8c8] sm:$0xff]  ;;  %v878_v31 = vld [vmem:[#allocation2 + $0x8b8] sm:$0xff] }
 0x1fd   :  { %969 = vmatpush.msra.mxu2 %v880_v27  ;;  %v887_v27 = vld [vmem:[#allocation2 + $0x900] sm:$0xff] }
 0x1ff   :  { %970 = vmatpush.msra.mxu2 %v878_v31 }
 0x201   :  { %v579_v41 = vpop.f32.mrf.mxu1  ;;  %v599_v47 = vpop.f32.mrf.mxu2  ;;  %971 = vmatpush.msra.mxu2 %v876_v35 }
 0x202   :  { %v580_v43 = vadd.f32 %v579_v41, %v560_v37  ;;  %v600_v51 = vadd.f32 %v599_v47, %v539_v44  ;;  %v873_v37 = vld [vmem:[#allocation2 + $0x890] sm:$0xff]  ;;  %v871_v41 = vld [vmem:[#allocation2 + $0x880] sm:$0xff]  ;;  %v910_v44 = vld [vmem:[#allocation2 + $0x9b8] sm:$0xff] }
 0x203   :  { %932 = vmatpush.msra.mxu0 %v873_v37  ;;  %972 = vmatpush.msra.mxu2 %v874_v39  ;;  %v870_v47 = vld [vmem:[#allocation2 + $0x878] sm:$0xff] }
 0x204   :  { %v1212_v48 = vmul.f32 -1.442695, %v580_v43  ;;  %990 = vmatpush.msra.mxu3 %v910_v44 }
 0x205   :  { %933 = vmatpush.msra.mxu0 %v871_v41 }
 0x206   :  { %1248 = vpow2.f32 %v1212_v48  ;;  %v908_v48 = vld [vmem:[#allocation2 + $0x9a8] sm:$0xff] }
 0x207   :  { %v619_v54 = vpop.f32.mrf.mxu3  ;;  %934 = vmatpush.msra.mxu0 %v869_v45  ;;  %991 = vmatpush.msra.mxu3 %v908_v48 }
 0x208   :  { %v620_v55 = vadd.f32 %v619_v54, %v600_v51  ;;  %v868_v51 = vld [vmem:[#allocation2 + $0x868] sm:$0xff]  ;;  %v903_v54 = vld [vmem:[#allocation2 + $0x980] sm:$0xff] }
 0x209   :  { %935 = vmatpush.msra.mxu0 %v867_v49  ;;  %992 = vmatpush.msra.mxu3 %v906_v52 }
 0x20a   :  { %v1213_v56 = vmul.f32 -1.442695, %v620_v55  ;;  %953 = vmatpush.msra.mxu1 %v903_v54 }
 0x20b   :  { %936 = vmatpush.msra.mxu0 %v865_v53 }
 0x20c   :  { %v1249_v57 = vpop.eup %1248  ;;  %1250 = vpow2.f32 %v1213_v56  ;;  %v904_v56 = vld [vmem:[#allocation2 + $0x988] sm:$0xff] }
 0x20d   :  { %v628_v58 = vadd.f32 1.0, %v1249_v57  ;;  %993 = vmatpush.msra.mxu3 %v904_v56  ;;  %v863_v57 = vld [vmem:[#allocation2 + $0x840] sm:$0xff] }
 0x20e   :  { %937 = vmatpush.msra.mxu0 %v863_v57 }
 0x20f   :  { %1252 = vrcp.f32 %v628_v58  ;;  %v641_v0 = vand.u32 2147483648, %v628_v58  ;;  %v639_v2 = vand.u32 2147483647, %v628_v58  ;;  %vm635_vm9 = vweird.f32 %v628_v58 }
 0x211   :  { %v642_v6 = vor.u32 1.1754944e-38, %v641_v0  ;;  %vm640_vm11 = vcmp.eq.f32.partialorder %v639_v2, 8.507059e+37  ;;  %v862_v0 = vld [vmem:[#allocation2 + $0x838] sm:$0xff] }
 0x212   :  { %v1251_v59 = vpop.eup %1250 }
 0x213   :  { %v629_v60 = vadd.f32 1.0, %v1251_v59  ;;  %v864_v59 = vld [vmem:[#allocation2 + $0x848] sm:$0xff] }
 0x215   :  { %v1253_v61 = vpop.eup %1252  ;;  %1254 = vrcp.f32 %v629_v60  ;;  %v656_v10 = vand.u32 2147483648, %v629_v60  ;;  %v654_v13 = vand.u32 2147483647, %v629_v60  ;;  %vm650_vm13 = vweird.f32 %v629_v60 }
 0x216   :  { %v631_v62 = vmul.f32 %v1253_v61, %v628_v58  ;;  %vm636_vm8 = vweird.f32 %v1253_v61  ;;  %v901_v58 = vld [vmem:[#allocation2 + $0x970] sm:$0xff] }
 0x217   :  { %vm637_vm10 = vmor %vm635_vm9, %vm636_vm8  ;;  %v657_v15 = vor.u32 1.1754944e-38, %v656_v10  ;;  %vm655_vm15 = vcmp.eq.f32.partialorder %v654_v13, 8.507059e+37  ;;  %954 = vmatpush.msra.mxu1 %v901_v58  ;;  %v858_v10 = vld [vmem:[#allocation2 + $0x818] sm:$0xff]  ;;  %v855_v13 = vld [vmem:[#allocation2 + $0x800] sm:$0xff] }
 0x218   :  { %v632_v63 = vsub.f32 1.0, %v631_v62  ;;  %v861_v62 = vld [vmem:[#allocation2 + $0x830] sm:$0xff] }
 0x219   :  { %938 = vmatpush.msra.mxu0 %v861_v62  ;;  %v1077_v58 = vld [vmem:[#allocation2 + $0xaf0] sm:$0xff] }
 0x21a   :  { %v633_v1 = vmul.f32 %v1253_v61, %v632_v63  ;;  %v899_v63 = vld [vmem:[#allocation2 + $0x960] sm:$0xff]  ;;  %v1073_v62 = vld [vmem:[#allocation2 + $0xad0] sm:$0xff] }
 0x21b   :  { %v1255_v3 = vpop.eup %1254  ;;  %955 = vmatpush.msra.mxu1 %v899_v63  ;;  %v1074_v63 = vld [vmem:[#allocation2 + $0xad8] sm:$0xff] }
 0x21c   :  { %v634_v4 = vadd.f32 %v1253_v61, %v633_v1  ;;  %v646_v5 = vmul.f32 %v1255_v3, %v629_v60  ;;  %vm651_vm12 = vweird.f32 %v1255_v3  ;;  %v728_v60 = vld [vmem:[#allocation4 + $0x6] sm:$0x3]  ;;  %v900_v1 = vld [vmem:[#allocation2 + $0x968] sm:$0xff] }
 0x21d   :  { %vm652_vm14 = vmor %vm650_vm13, %vm651_vm12  ;;  %v730_v2 = vperm.slane %v728_v60, 0  ;;  %v731_v19 = vperm.slane %v728_v60, 1  ;;  %v1075_v60 = vld [vmem:[#allocation2 + $0xae0] sm:$0xff] }
 0x21e   :  { %v638_v7 = vsel %vm637_vm10, %v1253_v61, %v634_v4  ;;  %v647_v8 = vsub.f32 1.0, %v646_v5  ;;  %v902_v61 = vld [vmem:[#allocation2 + $0x978] sm:$0xff]  ;;  %v897_v4 = vld [vmem:[#allocation2 + $0x950] sm:$0xff]  ;;  %v860_v5 = vld [vmem:[#allocation2 + $0x828] sm:$0xff] }
 0x21f   :  { %v643_v9 = vsel %vm640_vm11, %v642_v6, %v638_v7  ;;  %994 = vmatpush.msra.mxu3 %v902_v61  ;;  %956 = vmatpush.msra.mxu1 %v897_v4  ;;  %v898_v7 = vld [vmem:[#allocation2 + $0x958] sm:$0xff]  ;;  %v1076_v61 = vld [vmem:[#allocation2 + $0xae8] sm:$0xff]  ;;  %v1069_v4 = vld [vmem:[#allocation2 + $0xab0] sm:$0xff] }
 0x220   :  { %v660_v11 = vmul.f32 %v643_v9, %v580_v43  ;;  %v648_v12 = vmul.f32 %v1255_v3, %v647_v8  ;;  %v872_v43 = vld [vmem:[#allocation2 + $0x888] sm:$0xff]  ;;  %v857_v8 = vld [vmem:[#allocation2 + $0x810] sm:$0xff]  ;;  %v895_v9 = vld [vmem:[#allocation2 + $0x940] sm:$0xff] }
 0x221   :  { %973 = vmatpush.msra.mxu2 %v872_v43  ;;  %995 = vmatpush.msra.mxu3 %v900_v1  ;;  %v1109_v1 = vld [vmem:[#allocation2 + $0xbf0] sm:$0xff] }
 0x222   :  { %v649_v14 = vadd.f32 %v1255_v3, %v648_v12  ;;  %750 = vmatmul.f32.vlgmr.msrb.gmra.mxu0 %v660_v11  ;;  %790 = vmatmul.f32.vlgmr.msrb.gmra.mxu2 %v660_v11  ;;  %v896_v11 = vld [vmem:[#allocation2 + $0x948] sm:$0xff] }
 0x223   :  { %974 = vmatpush.msra.mxu2 %v870_v47  ;;  %996 = vmatpush.msra.mxu3 %v898_v7  ;;  %v1108_v7 = vld [vmem:[#allocation2 + $0xbe8] sm:$0xff] }
 0x224   :  { %v653_v16 = vsel %vm652_vm14, %v1255_v3, %v649_v14  ;;  %v859_v3 = vld [vmem:[#allocation2 + $0x820] sm:$0xff]  ;;  %957 = vmatpush.msra.mxu1 %v895_v9  ;;  %v893_v14 = vld [vmem:[#allocation2 + $0x930] sm:$0xff] }
 0x225   :  { %v658_v17 = vsel %vm655_vm15, %v657_v15, %v653_v16  ;;  %975 = vmatpush.msra.mxu2 %v868_v51  ;;  %939 = vmatpush.msra.mxu0 %v859_v3  ;;  %v856_v15 = vld [vmem:[#allocation2 + $0x808] sm:$0xff]  ;;  %v1110_v3 = vld [vmem:[#allocation2 + $0xbf8] sm:$0xff]  ;;  %v1105_v9 = vld [vmem:[#allocation2 + $0xbd0] sm:$0xff] }
 0x226   :  { %v661_v18 = vmul.f32 %v658_v17, %v620_v55  ;;  %v866_v55 = vld [vmem:[#allocation2 + $0x858] sm:$0xff]  ;;  %997 = vmatpush.msra.mxu3 %v896_v11  ;;  %958 = vmatpush.msra.mxu1 %v893_v14 }
 0x227   :  { %976 = vmatpush.msra.mxu2 %v866_v55  ;;  %940 = vmatpush.msra.mxu0 %v857_v8  ;;  %v894_v17 = vld [vmem:[#allocation2 + $0x938] sm:$0xff]  ;;  %v1067_v8 = vld [vmem:[#allocation2 + $0xaa0] sm:$0xff] }
 0x228   :  { %770 = vmatmul.f32.vlgmr.msrb.gmra.mxu1 %v661_v18  ;;  %810 = vmatmul.f32.vlgmr.msrb.gmra.mxu3 %v661_v18  ;;  %v1106_v11 = vld [vmem:[#allocation2 + $0xbd8] sm:$0xff] }
 0x229   :  { %977 = vmatpush.msra.mxu2 %v864_v59  ;;  %941 = vmatpush.msra.mxu0 %v855_v13  ;;  %v1078_v59 = vld [vmem:[#allocation2 + $0xaf8] sm:$0xff]  ;;  %v1103_v13 = vld [vmem:[#allocation2 + $0xbc0] sm:$0xff] }
 0x22a   :  { %998 = vmatpush.msra.mxu3 %v894_v17  ;;  %959 = vmatpush.msra.mxu1 %v891_v20  ;;  %v1066_v14 = vld [vmem:[#allocation2 + $0xa98] sm:$0xff]  ;;  %v1101_v17 = vld [vmem:[#allocation2 + $0xbb0] sm:$0xff] }
 0x22b   :  { %978 = vmatpush.msra.mxu2 %v862_v0  ;;  %1118 = vmatpush.msrb.mxu0 %v1077_v58  ;;  %v1071_v0 = vld [vmem:[#allocation2 + $0xac0] sm:$0xff]  ;;  %v1061_v20 = vld [vmem:[#allocation2 + $0xa70] sm:$0xff] }
 0x22c   :  { %999 = vmatpush.msra.mxu3 %v892_v21  ;;  %960 = vmatpush.msra.mxu1 %v889_v24  ;;  %v1099_v21 = vld [vmem:[#allocation2 + $0xba0] sm:$0xff] }
 0x22d   :  { %979 = vmatpush.msra.mxu2 %v860_v5  ;;  %1119 = vmatpush.msrb.mxu0 %v1075_v60  ;;  %v1107_v5 = vld [vmem:[#allocation2 + $0xbe0] sm:$0xff]  ;;  %v1084_v60 = vld [vmem:[#allocation2 + $0xb28] sm:$0xff] }
 0x22e   :  { %1000 = vmatpush.msra.mxu3 %v890_v25  ;;  %961 = vmatpush.msra.mxu1 %v887_v27  ;;  %v1059_v24 = vld [vmem:[#allocation2 + $0xa60] sm:$0xff]  ;;  %v1097_v25 = vld [vmem:[#allocation2 + $0xb90] sm:$0xff]  ;;  %v1098_v27 = vld [vmem:[#allocation2 + $0xb98] sm:$0xff] }
 0x22f   :  { %980 = vmatpush.msra.mxu2 %v858_v10  ;;  %1120 = vmatpush.msrb.mxu0 %v1073_v62  ;;  %v1068_v10 = vld [vmem:[#allocation2 + $0xaa8] sm:$0xff] }
 0x230   :  { %1001 = vmatpush.msra.mxu3 %v888_v28  ;;  %1138 = vmatpush.msrb.mxu1 %v1109_v1  ;;  %v1057_v28 = vld [vmem:[#allocation2 + $0xa50] sm:$0xff] }
 0x231   :  { %981 = vmatpush.msra.mxu2 %v856_v15  ;;  %1121 = vmatpush.msrb.mxu0 %v1071_v0  ;;  %v1104_v15 = vld [vmem:[#allocation2 + $0xbc8] sm:$0xff]  ;;  %v1082_v0 = vld [vmem:[#allocation2 + $0xb18] sm:$0xff] }
 0x232   :  { %1178 = vmatpush.msrb.mxu3 %v1110_v3  ;;  %1139 = vmatpush.msrb.mxu1 %v1107_v5  ;;  %v1080_v3 = vld [vmem:[#allocation2 + $0xb08] sm:$0xff] }
 0x233   :  { %1158 = vmatpush.msrb.mxu2 %v1078_v59  ;;  %1122 = vmatpush.msrb.mxu0 %v1069_v4  ;;  %v1083_v59 = vld [vmem:[#allocation2 + $0xb20] sm:$0xff] }
 0x234   :  { %1179 = vmatpush.msrb.mxu3 %v1108_v7  ;;  %1140 = vmatpush.msrb.mxu1 %v1105_v9 }
 0x235   :  { %1159 = vmatpush.msrb.mxu2 %v1076_v61  ;;  %1123 = vmatpush.msrb.mxu0 %v1067_v8 }
 0x236   :  { %1180 = vmatpush.msrb.mxu3 %v1106_v11  ;;  %1141 = vmatpush.msrb.mxu1 %v1103_v13 }
 0x237   :  { %1160 = vmatpush.msrb.mxu2 %v1074_v63  ;;  %v1081_v63 = vld [vmem:[#allocation2 + $0xb10] sm:$0xff] }
 0x238   :  { %1181 = vmatpush.msrb.mxu3 %v1104_v15  ;;  %1142 = vmatpush.msrb.mxu1 %v1101_v17 }
 0x23a   :  { %1143 = vmatpush.msrb.mxu1 %v1099_v21 }
 0x23c   :  { %1144 = vmatpush.msrb.mxu1 %v1097_v25 }
 0x29f   :  { %v751_v6 = vpop.f32.mrf.mxu0 }
 0x2a0   :  { %v752_v12 = vadd.f32 %v751_v6, %v730_v2  ;;  %v1072_v2 = vld [vmem:[#allocation2 + $0xac8] sm:$0xff]  ;;  %v1070_v6 = vld [vmem:[#allocation2 + $0xab8] sm:$0xff] }
 0x2a1   :  { %1161 = vmatpush.msrb.mxu2 %v1072_v2  ;;  %v1079_v2 = vld [vmem:[#allocation2 + $0xb00] sm:$0xff] }
 0x2a3   :  { %1162 = vmatpush.msrb.mxu2 %v1070_v6 }
 0x2a5   :  { %v771_v16 = vpop.f32.mrf.mxu1  ;;  %v791_v22 = vpop.f32.mrf.mxu2  ;;  %1163 = vmatpush.msrb.mxu2 %v1068_v10 }
 0x2a6   :  { %v772_v18 = vadd.f32 %v771_v16, %v752_v12  ;;  %v792_v26 = vadd.f32 %v791_v22, %v731_v19  ;;  %v1065_v12 = vld [vmem:[#allocation2 + $0xa90] sm:$0xff]  ;;  %v1063_v16 = vld [vmem:[#allocation2 + $0xa80] sm:$0xff]  ;;  %v1102_v19 = vld [vmem:[#allocation2 + $0xbb8] sm:$0xff] }
 0x2a7   :  { %1124 = vmatpush.msrb.mxu0 %v1065_v12  ;;  %1164 = vmatpush.msrb.mxu2 %v1066_v14  ;;  %v1062_v22 = vld [vmem:[#allocation2 + $0xa78] sm:$0xff] }
 0x2a8   :  { %v1214_v23 = vmul.f32 -1.442695, %v772_v18  ;;  %1182 = vmatpush.msrb.mxu3 %v1102_v19 }
 0x2a9   :  { %1125 = vmatpush.msrb.mxu0 %v1063_v16 }
 0x2aa   :  { %1256 = vpow2.f32 %v1214_v23  ;;  %v1100_v23 = vld [vmem:[#allocation2 + $0xba8] sm:$0xff] }
 0x2ab   :  { %v811_v29 = vpop.f32.mrf.mxu3  ;;  %1126 = vmatpush.msrb.mxu0 %v1061_v20  ;;  %1183 = vmatpush.msrb.mxu3 %v1100_v23 }
 0x2ac   :  { %v812_v30 = vadd.f32 %v811_v29, %v792_v26  ;;  %v1060_v26 = vld [vmem:[#allocation2 + $0xa68] sm:$0xff]  ;;  %v1095_v29 = vld [vmem:[#allocation2 + $0xb80] sm:$0xff] }
 0x2ad   :  { %1127 = vmatpush.msrb.mxu0 %v1059_v24  ;;  %1184 = vmatpush.msrb.mxu3 %v1098_v27 }
 0x2ae   :  { %v1215_v31 = vmul.f32 -1.442695, %v812_v30  ;;  %1145 = vmatpush.msrb.mxu1 %v1095_v29 }
 0x2af   :  { %1128 = vmatpush.msrb.mxu0 %v1057_v28 }
 0x2b0   :  { %v1257_v32 = vpop.eup %1256  ;;  %1258 = vpow2.f32 %v1215_v31  ;;  %v1096_v31 = vld [vmem:[#allocation2 + $0xb88] sm:$0xff] }
 0x2b1   :  { %v820_v33 = vadd.f32 1.0, %v1257_v32  ;;  %1185 = vmatpush.msrb.mxu3 %v1096_v31  ;;  %v1055_v32 = vld [vmem:[#allocation2 + $0xa40] sm:$0xff] }
 0x2b2   :  { %1129 = vmatpush.msrb.mxu0 %v1055_v32 }
 0x2b3   :  { %1260 = vrcp.f32 %v820_v33  ;;  %v833_v39 = vand.u32 2147483648, %v820_v33  ;;  %v831_v41 = vand.u32 2147483647, %v820_v33  ;;  %vm827_vm1 = vweird.f32 %v820_v33 }
 0x2b5   :  { %v834_v45 = vor.u32 1.1754944e-38, %v833_v39  ;;  %vm832_vm3 = vcmp.eq.f32.partialorder %v831_v41, 8.507059e+37  ;;  %v1054_v39 = vld [vmem:[#allocation2 + $0xa38] sm:$0xff] }
 0x2b6   :  { %v1259_v34 = vpop.eup %1258 }
 0x2b7   :  { %v821_v35 = vadd.f32 1.0, %v1259_v34  ;;  %v1056_v34 = vld [vmem:[#allocation2 + $0xa48] sm:$0xff] }
 0x2b9   :  { %v1261_v36 = vpop.eup %1260  ;;  %1262 = vrcp.f32 %v821_v35  ;;  %v848_v49 = vand.u32 2147483648, %v821_v35  ;;  %v846_v52 = vand.u32 2147483647, %v821_v35  ;;  %vm842_vm5 = vweird.f32 %v821_v35 }
 0x2ba   :  { %v823_v37 = vmul.f32 %v1261_v36, %v820_v33  ;;  %vm828_vm0 = vweird.f32 %v1261_v36  ;;  %v1093_v33 = vld [vmem:[#allocation2 + $0xb70] sm:$0xff] }
 0x2bb   :  { %vm829_vm2 = vmor %vm827_vm1, %vm828_vm0  ;;  %v849_v54 = vor.u32 1.1754944e-38, %v848_v49  ;;  %vm847_vm7 = vcmp.eq.f32.partialorder %v846_v52, 8.507059e+37  ;;  %1146 = vmatpush.msrb.mxu1 %v1093_v33  ;;  %v1050_v49 = vld [vmem:[#allocation2 + $0xa18] sm:$0xff]  ;;  %v1047_v52 = vld [vmem:[#allocation2 + $0xa00] sm:$0xff] }
 0x2bc   :  { %v824_v38 = vsub.f32 1.0, %v823_v37  ;;  %v1053_v37 = vld [vmem:[#allocation2 + $0xa30] sm:$0xff]  ;;  %v1112_v33 = vld [vmem:[#allocation4 + $0xa] sm:$0x3] }
 0x2bd   :  { %1130 = vmatpush.msrb.mxu0 %v1053_v37 }
 0x2be   :  { %v825_v40 = vmul.f32 %v1261_v36, %v824_v38  ;;  %v1091_v38 = vld [vmem:[#allocation2 + $0xb60] sm:$0xff] }
 0x2bf   :  { %v1263_v42 = vpop.eup %1262  ;;  %1147 = vmatpush.msrb.mxu1 %v1091_v38 }
 0x2c0   :  { %v826_v43 = vadd.f32 %v1261_v36, %v825_v40  ;;  %v838_v44 = vmul.f32 %v1263_v42, %v821_v35  ;;  %vm843_vm4 = vweird.f32 %v1263_v42  ;;  %v920_v35 = vld [vmem:[#allocation4 + $0x8] sm:$0x3] }
 0x2c1   :  { %vm844_vm6 = vmor %vm842_vm5, %vm843_vm4  ;;  %v1092_v40 = vld [vmem:[#allocation2 + $0xb68] sm:$0xff]  ;;  %v922_v41 = vperm.slane %v920_v35, 0  ;;  %v923_v58 = vperm.slane %v920_v35, 1 }
 0x2c2   :  { %v830_v46 = vsel %vm829_vm2, %v1261_v36, %v826_v43  ;;  %v839_v47 = vsub.f32 1.0, %v838_v44  ;;  %v1094_v36 = vld [vmem:[#allocation2 + $0xb78] sm:$0xff]  ;;  %v1089_v43 = vld [vmem:[#allocation2 + $0xb50] sm:$0xff]  ;;  %v1052_v44 = vld [vmem:[#allocation2 + $0xa28] sm:$0xff] }
 0x2c3   :  { %v835_v48 = vsel %vm832_vm3, %v834_v45, %v830_v46  ;;  %1186 = vmatpush.msrb.mxu3 %v1094_v36  ;;  %1148 = vmatpush.msrb.mxu1 %v1089_v43  ;;  %v1090_v46 = vld [vmem:[#allocation2 + $0xb58] sm:$0xff] }
 0x2c4   :  { %v852_v50 = vmul.f32 %v835_v48, %v772_v18  ;;  %v840_v51 = vmul.f32 %v1263_v42, %v839_v47  ;;  %v1064_v18 = vld [vmem:[#allocation2 + $0xa88] sm:$0xff]  ;;  %v1049_v47 = vld [vmem:[#allocation2 + $0xa10] sm:$0xff]  ;;  %v1087_v48 = vld [vmem:[#allocation2 + $0xb40] sm:$0xff] }
 0x2c5   :  { %1165 = vmatpush.msrb.mxu2 %v1064_v18  ;;  %1187 = vmatpush.msrb.mxu3 %v1092_v40 }
 0x2c6   :  { %v841_v53 = vadd.f32 %v1263_v42, %v840_v51  ;;  %942 = vmatmul.f32.vlgmr.msra.gmra.mxu0 %v852_v50  ;;  %982 = vmatmul.f32.vlgmr.msra.gmra.mxu2 %v852_v50  ;;  %v1088_v50 = vld [vmem:[#allocation2 + $0xb48] sm:$0xff] }
 0x2c7   :  { %1166 = vmatpush.msrb.mxu2 %v1062_v22  ;;  %1188 = vmatpush.msrb.mxu3 %v1090_v46 }
 0x2c8   :  { %v845_v55 = vsel %vm844_vm6, %v1263_v42, %v841_v53  ;;  %v1051_v42 = vld [vmem:[#allocation2 + $0xa20] sm:$0xff]  ;;  %1149 = vmatpush.msrb.mxu1 %v1087_v48  ;;  %v1085_v53 = vld [vmem:[#allocation2 + $0xb30] sm:$0xff] }
 0x2c9   :  { %v850_v56 = vsel %vm847_vm7, %v849_v54, %v845_v55  ;;  %1167 = vmatpush.msrb.mxu2 %v1060_v26  ;;  %1131 = vmatpush.msrb.mxu0 %v1051_v42  ;;  %v1048_v54 = vld [vmem:[#allocation2 + $0xa08] sm:$0xff] }
 0x2ca   :  { %v853_v57 = vmul.f32 %v850_v56, %v812_v30  ;;  %v1058_v30 = vld [vmem:[#allocation2 + $0xa58] sm:$0xff]  ;;  %1189 = vmatpush.msrb.mxu3 %v1088_v50  ;;  %1150 = vmatpush.msrb.mxu1 %v1085_v53 }
 0x2cb   :  { %1168 = vmatpush.msrb.mxu2 %v1058_v30  ;;  %1132 = vmatpush.msrb.mxu0 %v1049_v47  ;;  %v1086_v56 = vld [vmem:[#allocation2 + $0xb38] sm:$0xff] }
 0x2cc   :  { %962 = vmatmul.f32.vlgmr.msra.gmra.mxu1 %v853_v57  ;;  %1002 = vmatmul.f32.vlgmr.msra.gmra.mxu3 %v853_v57 }
 0x2cd   :  { %1169 = vmatpush.msrb.mxu2 %v1056_v34  ;;  %1133 = vmatpush.msrb.mxu0 %v1047_v52  ;;  %v1114_v34 = vperm.slane %v1112_v33, 0 }
 0x2ce   :  { %1190 = vmatpush.msrb.mxu3 %v1086_v56  ;;  %1151 = vmatpush.msrb.mxu1 %v1083_v59 }
 0x2cf   :  { %1170 = vmatpush.msrb.mxu2 %v1054_v39  ;;  %v1115_v39 = vperm.slane %v1112_v33, 1 }
 0x2d0   :  { %1191 = vmatpush.msrb.mxu3 %v1084_v60  ;;  %1152 = vmatpush.msrb.mxu1 %v1081_v63 }
 0x2d1   :  { %1171 = vmatpush.msrb.mxu2 %v1052_v44 }
 0x2d2   :  { %1192 = vmatpush.msrb.mxu3 %v1082_v0  ;;  %1153 = vmatpush.msrb.mxu1 %v1079_v2 }
 0x2d3   :  { %1172 = vmatpush.msrb.mxu2 %v1050_v49 }
 0x2d4   :  { %1193 = vmatpush.msrb.mxu3 %v1080_v3 }
 0x2d5   :  { %1173 = vmatpush.msrb.mxu2 %v1048_v54 }
 0x343   :  { %v943_v45 = vpop.f32.mrf.mxu0 }
 0x344   :  { %v944_v51 = vadd.f32 %v943_v45, %v922_v41 }
 0x349   :  { %v963_v55 = vpop.f32.mrf.mxu1  ;;  %v983_v61 = vpop.f32.mrf.mxu2 }
 0x34a   :  { %v964_v57 = vadd.f32 %v963_v55, %v944_v51  ;;  %v984_v1 = vadd.f32 %v983_v61, %v923_v58 }
 0x34c   :  { %v1216_v62 = vmul.f32 -1.442695, %v964_v57 }
 0x34e   :  { %1264 = vpow2.f32 %v1216_v62 }
 0x34f   :  { %v1003_v4 = vpop.f32.mrf.mxu3 }
 0x350   :  { %v1004_v5 = vadd.f32 %v1003_v4, %v984_v1 }
 0x352   :  { %v1217_v6 = vmul.f32 -1.442695, %v1004_v5 }
 0x354   :  { %v1265_v7 = vpop.eup %1264  ;;  %1266 = vpow2.f32 %v1217_v6 }
 0x355   :  { %v1012_v8 = vadd.f32 1.0, %v1265_v7 }
 0x357   :  { %1268 = vrcp.f32 %v1012_v8  ;;  %v1025_v14 = vand.u32 2147483648, %v1012_v8  ;;  %v1023_v16 = vand.u32 2147483647, %v1012_v8  ;;  %vm1019_vm9 = vweird.f32 %v1012_v8 }
 0x359   :  { %v1026_v20 = vor.u32 1.1754944e-38, %v1025_v14  ;;  %vm1024_vm11 = vcmp.eq.f32.partialorder %v1023_v16, 8.507059e+37 }
 0x35a   :  { %v1267_v9 = vpop.eup %1266 }
 0x35b   :  { %v1013_v10 = vadd.f32 1.0, %v1267_v9 }
 0x35d   :  { %v1269_v11 = vpop.eup %1268  ;;  %1270 = vrcp.f32 %v1013_v10  ;;  %v1040_v24 = vand.u32 2147483648, %v1013_v10  ;;  %v1038_v27 = vand.u32 2147483647, %v1013_v10  ;;  %vm1034_vm13 = vweird.f32 %v1013_v10 }
 0x35e   :  { %v1015_v12 = vmul.f32 %v1269_v11, %v1012_v8  ;;  %vm1020_vm8 = vweird.f32 %v1269_v11 }
 0x35f   :  { %vm1021_vm10 = vmor %vm1019_vm9, %vm1020_vm8  ;;  %v1041_v29 = vor.u32 1.1754944e-38, %v1040_v24  ;;  %vm1039_vm15 = vcmp.eq.f32.partialorder %v1038_v27, 8.507059e+37 }
 0x360   :  { %v1016_v13 = vsub.f32 1.0, %v1015_v12 }
 0x362   :  { %v1017_v15 = vmul.f32 %v1269_v11, %v1016_v13 }
 0x363   :  { %v1271_v17 = vpop.eup %1270 }
 0x364   :  { %v1018_v18 = vadd.f32 %v1269_v11, %v1017_v15  ;;  %v1030_v19 = vmul.f32 %v1271_v17, %v1013_v10  ;;  %vm1035_vm12 = vweird.f32 %v1271_v17 }
 0x365   :  { %vm1036_vm14 = vmor %vm1034_vm13, %vm1035_vm12 }
 0x366   :  { %v1022_v21 = vsel %vm1021_vm10, %v1269_v11, %v1018_v18  ;;  %v1031_v22 = vsub.f32 1.0, %v1030_v19 }
 0x367   :  { %v1027_v23 = vsel %vm1024_vm11, %v1026_v20, %v1022_v21 }
 0x368   :  { %v1044_v25 = vmul.f32 %v1027_v23, %v964_v57  ;;  %v1032_v26 = vmul.f32 %v1271_v17, %v1031_v22 }
 0x36a   :  { %v1033_v28 = vadd.f32 %v1271_v17, %v1032_v26  ;;  %1134 = vmatmul.f32.vlgmr.msrb.gmra.mxu0 %v1044_v25  ;;  %1174 = vmatmul.f32.vlgmr.msrb.gmra.mxu2 %v1044_v25 }
 0x36c   :  { %v1037_v30 = vsel %vm1036_vm14, %v1271_v17, %v1033_v28 }
 0x36d   :  { %v1042_v31 = vsel %vm1039_vm15, %v1041_v29, %v1037_v30 }
 0x36e   :  { %v1045_v32 = vmul.f32 %v1042_v31, %v1004_v5 }
 0x370   :  { %1154 = vmatmul.f32.vlgmr.msrb.gmra.mxu1 %v1045_v32  ;;  %1194 = vmatmul.f32.vlgmr.msrb.gmra.mxu3 %v1045_v32 }
 0x3e7   :  { %v1135_v35 = vpop.f32.mrf.mxu0 }
 0x3e8   :  { %v1136_v36 = vadd.f32 %v1135_v35, %v1114_v34 }
 0x3ed   :  { %v1155_v37 = vpop.f32.mrf.mxu1  ;;  %v1175_v40 = vpop.f32.mrf.mxu2 }
 0x3ee   :  { %v1156_v38 = vadd.f32 %v1155_v37, %v1136_v36  ;;  %v1176_v41 = vadd.f32 %v1175_v40, %v1115_v39 }
 0x3f0   :  { %1198 = vst [vmem:[%s1379_s3] sm:$0xff] %v1156_v38 }
 0x3f3   :  { %v1195_v42 = vpop.f32.mrf.mxu3 }
 0x3f4   :  { %v1196_v43 = vadd.f32 %v1195_v42, %v1176_v41 }
 0x3f6   :  { %1199 = vst [vmem:[%s1379_s3 + $0x8] sm:$0xff] %v1196_v43 }
 0x3f7   :  { %1204 = vsyncpa [#allocation3], 1 }
 0x3f8   :  { %1205 = vsyncpa [#allocation5], 1 }

</bundles_post_ra>
